<compile_context>
chip_gen: v7x
topology: tpu7x:2x2x1
jax: 0.10.0
libtpu: 0.0.40
codegen_flags: <defaults>
</compile_context>

<pallas_src>
import functools
import math

import jax
import jax.numpy as jnp
from jax.experimental import pallas as pl
from jax.experimental.pallas import tpu as pltpu


def cross_attn_kernel(tgt_ref, qpos_ref, mk_ref, pos_ref, mv_ref, vpos_ref,
                      bias_ref,
                      wq_ref, wk_ref, wv_ref, wo_ref,
                      bq_ref, bk_ref, bv_ref, bo_ref,
                      g_ref, beta_ref, o_ref, *, nhead, eps):
    tgt = tgt_ref[...]                          # (Lt*B, E)  residual / query base
    q_in = tgt + qpos_ref[...]                  # fused + query_pos
    k_in = mk_ref[...] + pos_ref[...]           # fused + pos
    v_in = mv_ref[...] + vpos_ref[...]          # fused + value_pos
    bias = bias_ref[...]                        # (Lt*B, Ls*B) additive mask (0 / -1e30)

    LtB, E = q_in.shape

    # TODO(synk): memory_mask / memory_key_padding_mask (None in this config) would
    # be folded into `bias` by the wrapper as additional additive -inf terms.

    proj = jnp.zeros((LtB, E), jnp.float32)
    for h in range(nhead):                      # static unroll; nhead is small
        # Per-head projections (weights pre-split; 1/sqrt(Dh) folded into wq/bq),
        # so no lane-dim slicing of q/k/v and no head concat anywhere.
        q_h = jnp.dot(q_in, wq_ref[h], preferred_element_type=jnp.float32) + bq_ref[h]
        k_h = jnp.dot(k_in, wk_ref[h], preferred_element_type=jnp.float32) + bk_ref[h]
        v_h = jnp.dot(v_in, wv_ref[h], preferred_element_type=jnp.float32) + bv_ref[h]

        # scores: q_h @ k_h^T without materializing a transpose
        s = jax.lax.dot_general(q_h, k_h, (((1,), (1,)), ((), ())),
                                preferred_element_type=jnp.float32)      # (Lt*B, Ls*B)
        s = s + bias
        s = s - jnp.max(s, axis=-1, keepdims=True)
        p = jnp.exp(s)
        p = p * pl.reciprocal(jnp.sum(p, axis=-1, keepdims=True), approx=False)

        o_h = jnp.dot(p, v_h, preferred_element_type=jnp.float32)        # (Lt*B, Dh)
        # per-head output-projection accumulation (replaces concat + big dot)
        proj = proj + jnp.dot(o_h, wo_ref[h], preferred_element_type=jnp.float32)

    proj = proj + bo_ref[...]

    # residual + LayerNorm over the (true) embedding dim
    x = tgt + proj
    mu = jnp.mean(x, axis=-1, keepdims=True)
    var = jnp.mean((x - mu) ** 2, axis=-1, keepdims=True)
    xn = (x - mu) * jax.lax.rsqrt(var + eps)
    o_ref[...] = xn * g_ref[...] + beta_ref[...]


def cross_attention_layer(tgt, memory_key, memory_value, params, *, nhead,
                          pos=None, query_pos=None, value_pos=None, eps=1e-5):
    """tgt: (Lt, B, E); memory_key/value: (Ls, B, E). Returns (Lt, B, E)."""
    Lt, B, E = tgt.shape
    Ls = memory_key.shape[0]
    Dh = E // nhead
    scale = 1.0 / math.sqrt(Dh)
    f32 = jnp.float32

    def rows(x, L):
        # (L, B, E) -> (L*B, E): row-major reshape, no transpose / no pos add here.
        if x is None:
            return jnp.zeros((L * B, E), f32)
        return x.reshape(L * B, E).astype(f32)

    # Additive attention bias: block-diagonal over batch (rows ordered (l, b),
    # b fastest), so one masked score matrix replaces per-batch slicing.
    rb = jnp.arange(Lt * B) % B
    cb = jnp.arange(Ls * B) % B
    attn_bias = jnp.where(rb[:, None] == cb[None, :], 0.0, -1e30).astype(f32)

    # Per-head weight split (weights stored as (in, out)); fold 1/sqrt(Dh) into q-side.
    def split_cols(w):                          # (E, E) -> (nhead, E, Dh)
        return jnp.transpose(w.reshape(E, nhead, Dh), (1, 0, 2)).astype(f32)

    wq_h = split_cols(params["wq"] * scale)
    wk_h = split_cols(params["wk"])
    wv_h = split_cols(params["wv"])
    wo_h = params["wo"].reshape(nhead, Dh, E).astype(f32)   # rows of wo grouped per head

    bq_h = (params["bq"] * scale).reshape(nhead, 1, Dh).astype(f32)
    bk_h = params["bk"].reshape(nhead, 1, Dh).astype(f32)
    bv_h = params["bv"].reshape(nhead, 1, Dh).astype(f32)
    bo = params["bo"].reshape(1, E).astype(f32)
    gamma = params["gamma"].reshape(1, E).astype(f32)
    beta = params["beta"].reshape(1, E).astype(f32)

    kernel = functools.partial(cross_attn_kernel, nhead=nhead, eps=eps)

    def spec2(shape):
        return pl.BlockSpec(shape, lambda i: (0, 0))

    def spec3(shape):
        return pl.BlockSpec(shape, lambda i: (0, 0, 0))

    out_rows = pl.pallas_call(
        kernel,
        out_shape=jax.ShapeDtypeStruct((Lt * B, E), f32),
        grid=(1,),
        in_specs=[
            spec2((Lt * B, E)), spec2((Lt * B, E)),          # tgt, query_pos
            spec2((Ls * B, E)), spec2((Ls * B, E)),          # memory_key, pos
            spec2((Ls * B, E)), spec2((Ls * B, E)),          # memory_value, value_pos
            spec2((Lt * B, Ls * B)),                         # additive attn bias
            spec3((nhead, E, Dh)), spec3((nhead, E, Dh)),
            spec3((nhead, E, Dh)), spec3((nhead, Dh, E)),
            spec3((nhead, 1, Dh)), spec3((nhead, 1, Dh)), spec3((nhead, 1, Dh)),
            spec2((1, E)),
            spec2((1, E)), spec2((1, E)),
        ],
        out_specs=pl.BlockSpec((Lt * B, E), lambda i: (0, 0)),
        compiler_params=pltpu.CompilerParams(dimension_semantics=("arbitrary",)),
    )(
        rows(tgt, Lt), rows(query_pos, Lt),
        rows(memory_key, Ls), rows(pos, Ls),
        rows(memory_value, Ls), rows(value_pos, Ls),
        attn_bias,
        wq_h, wk_h, wv_h, wo_h,
        bq_h, bk_h, bv_h, bo,
        gamma, beta,
    )

    # (L*B, E) -> (Lt, B, E): free reshape back to the PyTorch layout.
    return out_rows.reshape(Lt, B, E)


def _xavier_uniform(key, shape):
    fan_out, fan_in = shape
    a = math.sqrt(6.0 / (fan_in + fan_out))
    return jax.random.uniform(key, shape, jnp.float32, -a, a)


def _reference(tgt, mk, mv, params, nhead, pos, query_pos, value_pos, eps=1e-5):
    # pure-JAX reference of the same forward_post math
    q_in = tgt + query_pos
    k_in = mk + pos
    v_in = mv + value_pos
    Lt, B, E = tgt.shape
    Dh = E // nhead
    q = jnp.einsum("lbe,ef->lbf", q_in, params["wq"]) + params["bq"]
    k = jnp.einsum("lbe,ef->lbf", k_in, params["wk"]) + params["bk"]
    v = jnp.einsum("lbe,ef->lbf", v_in, params["wv"]) + params["bv"]
    qh = q.reshape(Lt, B, nhead, Dh) / math.sqrt(Dh)
    kh = k.reshape(-1, B, nhead, Dh)
    vh = v.reshape(-1, B, nhead, Dh)
    s = jnp.einsum("qbhd,kbhd->bhqk", qh, kh)
    p = jax.nn.softmax(s, axis=-1)
    o = jnp.einsum("bhqk,kbhd->qbhd", p, vh).reshape(Lt, B, E)
    o = jnp.einsum("lbe,ef->lbf", o, params["wo"]) + params["bo"]
    x = tgt + o
    mu = x.mean(-1, keepdims=True)
    var = ((x - mu) ** 2).mean(-1, keepdims=True)
    return (x - mu) / jnp.sqrt(var + eps) * params["gamma"] + params["beta"]


if __name__ == "__main__":
    d_model, nhead = 32, 4
    Lt, Ls, B = 8, 16, 2

    key = jax.random.PRNGKey(0)
    keys = jax.random.split(key, 12)

    # parameters (torch: in_proj_weight (3E,E) xavier, in_proj_bias=0,
    # out_proj.weight xavier, out_proj.bias=0, LayerNorm gamma=1 beta=0).
    # Stored here already transposed to (in, out) for x @ W.
    params = {
        "wq": _xavier_uniform(keys[0], (d_model, d_model)).T,
        "wk": _xavier_uniform(keys[1], (d_model, d_model)).T,
        "wv": _xavier_uniform(keys[2], (d_model, d_model)).T,
        "wo": _xavier_uniform(keys[3], (d_model, d_model)).T,
        "bq": jnp.zeros((d_model,), jnp.float32),
        "bk": jnp.zeros((d_model,), jnp.float32),
        "bv": jnp.zeros((d_model,), jnp.float32),
        "bo": jnp.zeros((d_model,), jnp.float32),
        "gamma": jnp.ones((d_model,), jnp.float32),
        "beta": jnp.zeros((d_model,), jnp.float32),
    }

    tgt = jax.random.normal(keys[4], (Lt, B, d_model), jnp.float32)
    memory_key = jax.random.normal(keys[5], (Ls, B, d_model), jnp.float32)
    memory_value = jax.random.normal(keys[6], (Ls, B, d_model), jnp.float32)
    query_pos = jax.random.normal(keys[7], (Lt, B, d_model), jnp.float32)
    pos = jax.random.normal(keys[8], (Ls, B, d_model), jnp.float32)
    value_pos = jax.random.normal(keys[9], (Ls, B, d_model), jnp.float32)

    out = cross_attention_layer(
        tgt, memory_key, memory_value, params, nhead=nhead,
        pos=pos, query_pos=query_pos, value_pos=value_pos)
    out = jax.block_until_ready(out)

    ref = _reference(tgt, memory_key, memory_value, params, nhead,
                     pos, query_pos, value_pos)
    assert out.shape == (Lt, B, d_model)
    assert jnp.allclose(out, ref, rtol=1e-4, atol=1e-4), \
        f"max err {jnp.max(jnp.abs(out - ref))}"

    print("KERNEL_OK")
</pallas_src>

<mosaic_0001>
module attributes {stable_mosaic.version = 11 : i64} {
  func.func @cross_attn_kernel(%arg0: i32, %arg1: memref<16x32xf32, #tpu.memory_space<vmem>>, %arg2: memref<16x32xf32, #tpu.memory_space<vmem>>, %arg3: memref<32x32xf32, #tpu.memory_space<vmem>>, %arg4: memref<32x32xf32, #tpu.memory_space<vmem>>, %arg5: memref<32x32xf32, #tpu.memory_space<vmem>>, %arg6: memref<32x32xf32, #tpu.memory_space<vmem>>, %arg7: memref<16x32xf32, #tpu.memory_space<vmem>>, %arg8: memref<4x32x8xf32, #tpu.memory_space<vmem>>, %arg9: memref<4x32x8xf32, #tpu.memory_space<vmem>>, %arg10: memref<4x32x8xf32, #tpu.memory_space<vmem>>, %arg11: memref<4x8x32xf32, #tpu.memory_space<vmem>>, %arg12: memref<4x1x8xf32, #tpu.memory_space<vmem>>, %arg13: memref<4x1x8xf32, #tpu.memory_space<vmem>>, %arg14: memref<4x1x8xf32, #tpu.memory_space<vmem>>, %arg15: memref<1x32xf32, #tpu.memory_space<vmem>>, %arg16: memref<1x32xf32, #tpu.memory_space<vmem>>, %arg17: memref<1x32xf32, #tpu.memory_space<vmem>>, %arg18: memref<16x32xf32, #tpu.memory_space<vmem>>) attributes {dimension_semantics = [#tpu.dimension_semantics<arbitrary>], iteration_bounds = array<i64: 1>, scalar_prefetch = 0 : i64, scratch_operands = 0 : i64, tpu.core_type = #tpu.core_type<tc>, window_params = [{pipeline_mode = #tpu.pipeline_mode<synchronous>, transform_indices = @transform_0, window_bounds = array<i64: 16, 32>}, {pipeline_mode = #tpu.pipeline_mode<synchronous>, transform_indices = @transform_1, window_bounds = array<i64: 16, 32>}, {pipeline_mode = #tpu.pipeline_mode<synchronous>, transform_indices = @transform_2, window_bounds = array<i64: 32, 32>}, {pipeline_mode = #tpu.pipeline_mode<synchronous>, transform_indices = @transform_3, window_bounds = array<i64: 32, 32>}, {pipeline_mode = #tpu.pipeline_mode<synchronous>, transform_indices = @transform_4, window_bounds = array<i64: 32, 32>}, {pipeline_mode = #tpu.pipeline_mode<synchronous>, transform_indices = @transform_5, window_bounds = array<i64: 32, 32>}, {pipeline_mode = #tpu.pipeline_mode<synchronous>, transform_indices = @transform_6, window_bounds = array<i64: 16, 32>}, {pipeline_mode = #tpu.pipeline_mode<synchronous>, transform_indices = @transform_7, window_bounds = array<i64: 4, 32, 8>}, {pipeline_mode = #tpu.pipeline_mode<synchronous>, transform_indices = @transform_8, window_bounds = array<i64: 4, 32, 8>}, {pipeline_mode = #tpu.pipeline_mode<synchronous>, transform_indices = @transform_9, window_bounds = array<i64: 4, 32, 8>}, {pipeline_mode = #tpu.pipeline_mode<synchronous>, transform_indices = @transform_10, window_bounds = array<i64: 4, 8, 32>}, {pipeline_mode = #tpu.pipeline_mode<synchronous>, transform_indices = @transform_11, window_bounds = array<i64: 4, 1, 8>}, {pipeline_mode = #tpu.pipeline_mode<synchronous>, transform_indices = @transform_12, window_bounds = array<i64: 4, 1, 8>}, {pipeline_mode = #tpu.pipeline_mode<synchronous>, transform_indices = @transform_13, window_bounds = array<i64: 4, 1, 8>}, {pipeline_mode = #tpu.pipeline_mode<synchronous>, transform_indices = @transform_14, window_bounds = array<i64: 1, 32>}, {pipeline_mode = #tpu.pipeline_mode<synchronous>, transform_indices = @transform_15, window_bounds = array<i64: 1, 32>}, {pipeline_mode = #tpu.pipeline_mode<synchronous>, transform_indices = @transform_16, window_bounds = array<i64: 1, 32>}, {pipeline_mode = #tpu.pipeline_mode<synchronous>, transform_indices = @transform_17, window_bounds = array<i64: 16, 32>}]} {
    %c0 = arith.constant 0 : index
    %c0_0 = arith.constant 0 : index
    %0 = vector.load %arg1[%c0, %c0_0] : memref<16x32xf32, #tpu.memory_space<vmem>>, vector<16x32xf32>
    %c0_1 = arith.constant 0 : index
    %c0_2 = arith.constant 0 : index
    %1 = vector.load %arg2[%c0_1, %c0_2] : memref<16x32xf32, #tpu.memory_space<vmem>>, vector<16x32xf32>
    %2 = arith.addf %0, %1 : vector<16x32xf32>
    %c0_3 = arith.constant 0 : index
    %c0_4 = arith.constant 0 : index
    %3 = vector.load %arg3[%c0_3, %c0_4] : memref<32x32xf32, #tpu.memory_space<vmem>>, vector<32x32xf32>
    %c0_5 = arith.constant 0 : index
    %c0_6 = arith.constant 0 : index
    %4 = vector.load %arg4[%c0_5, %c0_6] : memref<32x32xf32, #tpu.memory_space<vmem>>, vector<32x32xf32>
    %5 = arith.addf %3, %4 : vector<32x32xf32>
    %c0_7 = arith.constant 0 : index
    %c0_8 = arith.constant 0 : index
    %6 = vector.load %arg5[%c0_7, %c0_8] : memref<32x32xf32, #tpu.memory_space<vmem>>, vector<32x32xf32>
    %c0_9 = arith.constant 0 : index
    %c0_10 = arith.constant 0 : index
    %7 = vector.load %arg6[%c0_9, %c0_10] : memref<32x32xf32, #tpu.memory_space<vmem>>, vector<32x32xf32>
    %8 = arith.addf %6, %7 : vector<32x32xf32>
    %c0_11 = arith.constant 0 : index
    %c0_12 = arith.constant 0 : index
    %9 = vector.load %arg7[%c0_11, %c0_12] : memref<16x32xf32, #tpu.memory_space<vmem>>, vector<16x32xf32>
    %cst = arith.constant 0.000000e+00 : f32
    %10 = vector.broadcast %cst : f32 to vector<16x32xf32>
    %c0_13 = arith.constant 0 : index
    %c0_14 = arith.constant 0 : index
    %c0_15 = arith.constant 0 : index
    %11 = vector.load %arg8[%c0_13, %c0_14, %c0_15] : memref<4x32x8xf32, #tpu.memory_space<vmem>>, vector<1x32x8xf32>
    %12 = vector.shape_cast %11 : vector<1x32x8xf32> to vector<32x8xf32>
    %cst_16 = arith.constant dense<0.000000e+00> : vector<16x8xf32>
    %13 = tpu.matmul %2, %12, %cst_16 {dimension_numbers = #tpu.dot_dimension_numbers<[1], [0], [0], [1], [0, 0, 1, 1], [], []>} : vector<16x32xf32>, vector<32x8xf32>, vector<16x8xf32> -> vector<16x8xf32>
    %c0_17 = arith.constant 0 : index
    %c0_18 = arith.constant 0 : index
    %c0_19 = arith.constant 0 : index
    %14 = vector.load %arg12[%c0_17, %c0_18, %c0_19] : memref<4x1x8xf32, #tpu.memory_space<vmem>>, vector<1x1x8xf32>
    %15 = vector.shape_cast %14 : vector<1x1x8xf32> to vector<1x8xf32>
    %16 = vector.broadcast %15 : vector<1x8xf32> to vector<16x8xf32>
    %17 = arith.addf %13, %16 : vector<16x8xf32>
    %c0_20 = arith.constant 0 : index
    %c0_21 = arith.constant 0 : index
    %c0_22 = arith.constant 0 : index
    %18 = vector.load %arg9[%c0_20, %c0_21, %c0_22] : memref<4x32x8xf32, #tpu.memory_space<vmem>>, vector<1x32x8xf32>
    %19 = vector.shape_cast %18 : vector<1x32x8xf32> to vector<32x8xf32>
    %cst_23 = arith.constant dense<0.000000e+00> : vector<32x8xf32>
    %20 = tpu.matmul %5, %19, %cst_23 {dimension_numbers = #tpu.dot_dimension_numbers<[1], [0], [0], [1], [0, 0, 1, 1], [], []>} : vector<32x32xf32>, vector<32x8xf32>, vector<32x8xf32> -> vector<32x8xf32>
    %c0_24 = arith.constant 0 : index
    %c0_25 = arith.constant 0 : index
    %c0_26 = arith.constant 0 : index
    %21 = vector.load %arg13[%c0_24, %c0_25, %c0_26] : memref<4x1x8xf32, #tpu.memory_space<vmem>>, vector<1x1x8xf32>
    %22 = vector.shape_cast %21 : vector<1x1x8xf32> to vector<1x8xf32>
    %23 = vector.broadcast %22 : vector<1x8xf32> to vector<32x8xf32>
    %24 = arith.addf %20, %23 : vector<32x8xf32>
    %c0_27 = arith.constant 0 : index
    %c0_28 = arith.constant 0 : index
    %c0_29 = arith.constant 0 : index
    %25 = vector.load %arg10[%c0_27, %c0_28, %c0_29] : memref<4x32x8xf32, #tpu.memory_space<vmem>>, vector<1x32x8xf32>
    %26 = vector.shape_cast %25 : vector<1x32x8xf32> to vector<32x8xf32>
    %cst_30 = arith.constant dense<0.000000e+00> : vector<32x8xf32>
    %27 = tpu.matmul %8, %26, %cst_30 {dimension_numbers = #tpu.dot_dimension_numbers<[1], [0], [0], [1], [0, 0, 1, 1], [], []>} : vector<32x32xf32>, vector<32x8xf32>, vector<32x8xf32> -> vector<32x8xf32>
    %c0_31 = arith.constant 0 : index
    %c0_32 = arith.constant 0 : index
    %c0_33 = arith.constant 0 : index
    %28 = vector.load %arg14[%c0_31, %c0_32, %c0_33] : memref<4x1x8xf32, #tpu.memory_space<vmem>>, vector<1x1x8xf32>
    %29 = vector.shape_cast %28 : vector<1x1x8xf32> to vector<1x8xf32>
    %30 = vector.broadcast %29 : vector<1x8xf32> to vector<32x8xf32>
    %31 = arith.addf %27, %30 : vector<32x8xf32>
    %cst_34 = arith.constant dense<0.000000e+00> : vector<16x32xf32>
    %32 = tpu.matmul %17, %24, %cst_34 {dimension_numbers = #tpu.dot_dimension_numbers<[1], [1], [0], [0], [0, 0, 1, 0], [], []>} : vector<16x8xf32>, vector<32x8xf32>, vector<16x32xf32> -> vector<16x32xf32>
    %33 = arith.addf %32, %9 : vector<16x32xf32>
    %cst_35 = arith.constant dense<0xFF800000> : vector<16xf32>
    %34 = vector.multi_reduction <maximumf>, %33, %cst_35 [1] : vector<16x32xf32> to vector<16xf32>
    %35 = vector.shape_cast %34 : vector<16xf32> to vector<16x1xf32>
    %36 = vector.broadcast %35 : vector<16x1xf32> to vector<16x32xf32>
    %37 = arith.subf %33, %36 : vector<16x32xf32>
    %38 = math.exp %37 : vector<16x32xf32>
    %cst_36 = arith.constant dense<0.000000e+00> : vector<16xf32>
    %39 = vector.multi_reduction <add>, %38, %cst_36 [1] : vector<16x32xf32> to vector<16xf32>
    %40 = vector.shape_cast %39 : vector<16xf32> to vector<16x1xf32>
    %41 = tpu.reciprocal %40 : vector<16x1xf32> -> vector<16x1xf32>
    %42 = vector.broadcast %41 : vector<16x1xf32> to vector<16x32xf32>
    %43 = arith.mulf %38, %42 : vector<16x32xf32>
    %cst_37 = arith.constant dense<0.000000e+00> : vector<16x8xf32>
    %44 = tpu.matmul %43, %31, %cst_37 {dimension_numbers = #tpu.dot_dimension_numbers<[1], [0], [0], [1], [0, 0, 1, 1], [], []>} : vector<16x32xf32>, vector<32x8xf32>, vector<16x8xf32> -> vector<16x8xf32>
    %c0_38 = arith.constant 0 : index
    %c0_39 = arith.constant 0 : index
    %c0_40 = arith.constant 0 : index
    %45 = vector.load %arg11[%c0_38, %c0_39, %c0_40] : memref<4x8x32xf32, #tpu.memory_space<vmem>>, vector<1x8x32xf32>
    %46 = vector.shape_cast %45 : vector<1x8x32xf32> to vector<8x32xf32>
    %cst_41 = arith.constant dense<0.000000e+00> : vector<16x32xf32>
    %47 = tpu.matmul %44, %46, %cst_41 {dimension_numbers = #tpu.dot_dimension_numbers<[1], [0], [0], [1], [0, 0, 1, 1], [], []>} : vector<16x8xf32>, vector<8x32xf32>, vector<16x32xf32> -> vector<16x32xf32>
    %48 = arith.addf %10, %47 : vector<16x32xf32>
    %c1 = arith.constant 1 : index
    %c0_42 = arith.constant 0 : index
    %c0_43 = arith.constant 0 : index
    %49 = vector.load %arg8[%c1, %c0_42, %c0_43] : memref<4x32x8xf32, #tpu.memory_space<vmem>>, vector<1x32x8xf32>
    %50 = vector.shape_cast %49 : vector<1x32x8xf32> to vector<32x8xf32>
    %cst_44 = arith.constant dense<0.000000e+00> : vector<16x8xf32>
    %51 = tpu.matmul %2, %50, %cst_44 {dimension_numbers = #tpu.dot_dimension_numbers<[1], [0], [0], [1], [0, 0, 1, 1], [], []>} : vector<16x32xf32>, vector<32x8xf32>, vector<16x8xf32> -> vector<16x8xf32>
    %c1_45 = arith.constant 1 : index
    %c0_46 = arith.constant 0 : index
    %c0_47 = arith.constant 0 : index
    %52 = vector.load %arg12[%c1_45, %c0_46, %c0_47] : memref<4x1x8xf32, #tpu.memory_space<vmem>>, vector<1x1x8xf32>
    %53 = vector.shape_cast %52 : vector<1x1x8xf32> to vector<1x8xf32>
    %54 = vector.broadcast %53 : vector<1x8xf32> to vector<16x8xf32>
    %55 = arith.addf %51, %54 : vector<16x8xf32>
    %c1_48 = arith.constant 1 : index
    %c0_49 = arith.constant 0 : index
    %c0_50 = arith.constant 0 : index
    %56 = vector.load %arg9[%c1_48, %c0_49, %c0_50] : memref<4x32x8xf32, #tpu.memory_space<vmem>>, vector<1x32x8xf32>
    %57 = vector.shape_cast %56 : vector<1x32x8xf32> to vector<32x8xf32>
    %cst_51 = arith.constant dense<0.000000e+00> : vector<32x8xf32>
    %58 = tpu.matmul %5, %57, %cst_51 {dimension_numbers = #tpu.dot_dimension_numbers<[1], [0], [0], [1], [0, 0, 1, 1], [], []>} : vector<32x32xf32>, vector<32x8xf32>, vector<32x8xf32> -> vector<32x8xf32>
    %c1_52 = arith.constant 1 : index
    %c0_53 = arith.constant 0 : index
    %c0_54 = arith.constant 0 : index
    %59 = vector.load %arg13[%c1_52, %c0_53, %c0_54] : memref<4x1x8xf32, #tpu.memory_space<vmem>>, vector<1x1x8xf32>
    %60 = vector.shape_cast %59 : vector<1x1x8xf32> to vector<1x8xf32>
    %61 = vector.broadcast %60 : vector<1x8xf32> to vector<32x8xf32>
    %62 = arith.addf %58, %61 : vector<32x8xf32>
    %c1_55 = arith.constant 1 : index
    %c0_56 = arith.constant 0 : index
    %c0_57 = arith.constant 0 : index
    %63 = vector.load %arg10[%c1_55, %c0_56, %c0_57] : memref<4x32x8xf32, #tpu.memory_space<vmem>>, vector<1x32x8xf32>
    %64 = vector.shape_cast %63 : vector<1x32x8xf32> to vector<32x8xf32>
    %cst_58 = arith.constant dense<0.000000e+00> : vector<32x8xf32>
    %65 = tpu.matmul %8, %64, %cst_58 {dimension_numbers = #tpu.dot_dimension_numbers<[1], [0], [0], [1], [0, 0, 1, 1], [], []>} : vector<32x32xf32>, vector<32x8xf32>, vector<32x8xf32> -> vector<32x8xf32>
    %c1_59 = arith.constant 1 : index
    %c0_60 = arith.constant 0 : index
    %c0_61 = arith.constant 0 : index
    %66 = vector.load %arg14[%c1_59, %c0_60, %c0_61] : memref<4x1x8xf32, #tpu.memory_space<vmem>>, vector<1x1x8xf32>
    %67 = vector.shape_cast %66 : vector<1x1x8xf32> to vector<1x8xf32>
    %68 = vector.broadcast %67 : vector<1x8xf32> to vector<32x8xf32>
    %69 = arith.addf %65, %68 : vector<32x8xf32>
    %cst_62 = arith.constant dense<0.000000e+00> : vector<16x32xf32>
    %70 = tpu.matmul %55, %62, %cst_62 {dimension_numbers = #tpu.dot_dimension_numbers<[1], [1], [0], [0], [0, 0, 1, 0], [], []>} : vector<16x8xf32>, vector<32x8xf32>, vector<16x32xf32> -> vector<16x32xf32>
    %71 = arith.addf %70, %9 : vector<16x32xf32>
    %cst_63 = arith.constant dense<0xFF800000> : vector<16xf32>
    %72 = vector.multi_reduction <maximumf>, %71, %cst_63 [1] : vector<16x32xf32> to vector<16xf32>
    %73 = vector.shape_cast %72 : vector<16xf32> to vector<16x1xf32>
    %74 = vector.broadcast %73 : vector<16x1xf32> to vector<16x32xf32>
    %75 = arith.subf %71, %74 : vector<16x32xf32>
    %76 = math.exp %75 : vector<16x32xf32>
    %cst_64 = arith.constant dense<0.000000e+00> : vector<16xf32>
    %77 = vector.multi_reduction <add>, %76, %cst_64 [1] : vector<16x32xf32> to vector<16xf32>
    %78 = vector.shape_cast %77 : vector<16xf32> to vector<16x1xf32>
    %79 = tpu.reciprocal %78 : vector<16x1xf32> -> vector<16x1xf32>
    %80 = vector.broadcast %79 : vector<16x1xf32> to vector<16x32xf32>
    %81 = arith.mulf %76, %80 : vector<16x32xf32>
    %cst_65 = arith.constant dense<0.000000e+00> : vector<16x8xf32>
    %82 = tpu.matmul %81, %69, %cst_65 {dimension_numbers = #tpu.dot_dimension_numbers<[1], [0], [0], [1], [0, 0, 1, 1], [], []>} : vector<16x32xf32>, vector<32x8xf32>, vector<16x8xf32> -> vector<16x8xf32>
    %c1_66 = arith.constant 1 : index
    %c0_67 = arith.constant 0 : index
    %c0_68 = arith.constant 0 : index
    %83 = vector.load %arg11[%c1_66, %c0_67, %c0_68] : memref<4x8x32xf32, #tpu.memory_space<vmem>>, vector<1x8x32xf32>
    %84 = vector.shape_cast %83 : vector<1x8x32xf32> to vector<8x32xf32>
    %cst_69 = arith.constant dense<0.000000e+00> : vector<16x32xf32>
    %85 = tpu.matmul %82, %84, %cst_69 {dimension_numbers = #tpu.dot_dimension_numbers<[1], [0], [0], [1], [0, 0, 1, 1], [], []>} : vector<16x8xf32>, vector<8x32xf32>, vector<16x32xf32> -> vector<16x32xf32>
    %86 = arith.addf %48, %85 : vector<16x32xf32>
    %c2 = arith.constant 2 : index
    %c0_70 = arith.constant 0 : index
    %c0_71 = arith.constant 0 : index
    %87 = vector.load %arg8[%c2, %c0_70, %c0_71] : memref<4x32x8xf32, #tpu.memory_space<vmem>>, vector<1x32x8xf32>
    %88 = vector.shape_cast %87 : vector<1x32x8xf32> to vector<32x8xf32>
    %cst_72 = arith.constant dense<0.000000e+00> : vector<16x8xf32>
    %89 = tpu.matmul %2, %88, %cst_72 {dimension_numbers = #tpu.dot_dimension_numbers<[1], [0], [0], [1], [0, 0, 1, 1], [], []>} : vector<16x32xf32>, vector<32x8xf32>, vector<16x8xf32> -> vector<16x8xf32>
    %c2_73 = arith.constant 2 : index
    %c0_74 = arith.constant 0 : index
    %c0_75 = arith.constant 0 : index
    %90 = vector.load %arg12[%c2_73, %c0_74, %c0_75] : memref<4x1x8xf32, #tpu.memory_space<vmem>>, vector<1x1x8xf32>
    %91 = vector.shape_cast %90 : vector<1x1x8xf32> to vector<1x8xf32>
    %92 = vector.broadcast %91 : vector<1x8xf32> to vector<16x8xf32>
    %93 = arith.addf %89, %92 : vector<16x8xf32>
    %c2_76 = arith.constant 2 : index
    %c0_77 = arith.constant 0 : index
    %c0_78 = arith.constant 0 : index
    %94 = vector.load %arg9[%c2_76, %c0_77, %c0_78] : memref<4x32x8xf32, #tpu.memory_space<vmem>>, vector<1x32x8xf32>
    %95 = vector.shape_cast %94 : vector<1x32x8xf32> to vector<32x8xf32>
    %cst_79 = arith.constant dense<0.000000e+00> : vector<32x8xf32>
    %96 = tpu.matmul %5, %95, %cst_79 {dimension_numbers = #tpu.dot_dimension_numbers<[1], [0], [0], [1], [0, 0, 1, 1], [], []>} : vector<32x32xf32>, vector<32x8xf32>, vector<32x8xf32> -> vector<32x8xf32>
    %c2_80 = arith.constant 2 : index
    %c0_81 = arith.constant 0 : index
    %c0_82 = arith.constant 0 : index
    %97 = vector.load %arg13[%c2_80, %c0_81, %c0_82] : memref<4x1x8xf32, #tpu.memory_space<vmem>>, vector<1x1x8xf32>
    %98 = vector.shape_cast %97 : vector<1x1x8xf32> to vector<1x8xf32>
    %99 = vector.broadcast %98 : vector<1x8xf32> to vector<32x8xf32>
    %100 = arith.addf %96, %99 : vector<32x8xf32>
    %c2_83 = arith.constant 2 : index
    %c0_84 = arith.constant 0 : index
    %c0_85 = arith.constant 0 : index
    %101 = vector.load %arg10[%c2_83, %c0_84, %c0_85] : memref<4x32x8xf32, #tpu.memory_space<vmem>>, vector<1x32x8xf32>
    %102 = vector.shape_cast %101 : vector<1x32x8xf32> to vector<32x8xf32>
    %cst_86 = arith.constant dense<0.000000e+00> : vector<32x8xf32>
    %103 = tpu.matmul %8, %102, %cst_86 {dimension_numbers = #tpu.dot_dimension_numbers<[1], [0], [0], [1], [0, 0, 1, 1], [], []>} : vector<32x32xf32>, vector<32x8xf32>, vector<32x8xf32> -> vector<32x8xf32>
    %c2_87 = arith.constant 2 : index
    %c0_88 = arith.constant 0 : index
    %c0_89 = arith.constant 0 : index
    %104 = vector.load %arg14[%c2_87, %c0_88, %c0_89] : memref<4x1x8xf32, #tpu.memory_space<vmem>>, vector<1x1x8xf32>
    %105 = vector.shape_cast %104 : vector<1x1x8xf32> to vector<1x8xf32>
    %106 = vector.broadcast %105 : vector<1x8xf32> to vector<32x8xf32>
    %107 = arith.addf %103, %106 : vector<32x8xf32>
    %cst_90 = arith.constant dense<0.000000e+00> : vector<16x32xf32>
    %108 = tpu.matmul %93, %100, %cst_90 {dimension_numbers = #tpu.dot_dimension_numbers<[1], [1], [0], [0], [0, 0, 1, 0], [], []>} : vector<16x8xf32>, vector<32x8xf32>, vector<16x32xf32> -> vector<16x32xf32>
    %109 = arith.addf %108, %9 : vector<16x32xf32>
    %cst_91 = arith.constant dense<0xFF800000> : vector<16xf32>
    %110 = vector.multi_reduction <maximumf>, %109, %cst_91 [1] : vector<16x32xf32> to vector<16xf32>
    %111 = vector.shape_cast %110 : vector<16xf32> to vector<16x1xf32>
    %112 = vector.broadcast %111 : vector<16x1xf32> to vector<16x32xf32>
    %113 = arith.subf %109, %112 : vector<16x32xf32>
    %114 = math.exp %113 : vector<16x32xf32>
    %cst_92 = arith.constant dense<0.000000e+00> : vector<16xf32>
    %115 = vector.multi_reduction <add>, %114, %cst_92 [1] : vector<16x32xf32> to vector<16xf32>
    %116 = vector.shape_cast %115 : vector<16xf32> to vector<16x1xf32>
    %117 = tpu.reciprocal %116 : vector<16x1xf32> -> vector<16x1xf32>
    %118 = vector.broadcast %117 : vector<16x1xf32> to vector<16x32xf32>
    %119 = arith.mulf %114, %118 : vector<16x32xf32>
    %cst_93 = arith.constant dense<0.000000e+00> : vector<16x8xf32>
    %120 = tpu.matmul %119, %107, %cst_93 {dimension_numbers = #tpu.dot_dimension_numbers<[1], [0], [0], [1], [0, 0, 1, 1], [], []>} : vector<16x32xf32>, vector<32x8xf32>, vector<16x8xf32> -> vector<16x8xf32>
    %c2_94 = arith.constant 2 : index
    %c0_95 = arith.constant 0 : index
    %c0_96 = arith.constant 0 : index
    %121 = vector.load %arg11[%c2_94, %c0_95, %c0_96] : memref<4x8x32xf32, #tpu.memory_space<vmem>>, vector<1x8x32xf32>
    %122 = vector.shape_cast %121 : vector<1x8x32xf32> to vector<8x32xf32>
    %cst_97 = arith.constant dense<0.000000e+00> : vector<16x32xf32>
    %123 = tpu.matmul %120, %122, %cst_97 {dimension_numbers = #tpu.dot_dimension_numbers<[1], [0], [0], [1], [0, 0, 1, 1], [], []>} : vector<16x8xf32>, vector<8x32xf32>, vector<16x32xf32> -> vector<16x32xf32>
    %124 = arith.addf %86, %123 : vector<16x32xf32>
    %c3 = arith.constant 3 : index
    %c0_98 = arith.constant 0 : index
    %c0_99 = arith.constant 0 : index
    %125 = vector.load %arg8[%c3, %c0_98, %c0_99] : memref<4x32x8xf32, #tpu.memory_space<vmem>>, vector<1x32x8xf32>
    %126 = vector.shape_cast %125 : vector<1x32x8xf32> to vector<32x8xf32>
    %cst_100 = arith.constant dense<0.000000e+00> : vector<16x8xf32>
    %127 = tpu.matmul %2, %126, %cst_100 {dimension_numbers = #tpu.dot_dimension_numbers<[1], [0], [0], [1], [0, 0, 1, 1], [], []>} : vector<16x32xf32>, vector<32x8xf32>, vector<16x8xf32> -> vector<16x8xf32>
    %c3_101 = arith.constant 3 : index
    %c0_102 = arith.constant 0 : index
    %c0_103 = arith.constant 0 : index
    %128 = vector.load %arg12[%c3_101, %c0_102, %c0_103] : memref<4x1x8xf32, #tpu.memory_space<vmem>>, vector<1x1x8xf32>
    %129 = vector.shape_cast %128 : vector<1x1x8xf32> to vector<1x8xf32>
    %130 = vector.broadcast %129 : vector<1x8xf32> to vector<16x8xf32>
    %131 = arith.addf %127, %130 : vector<16x8xf32>
    %c3_104 = arith.constant 3 : index
    %c0_105 = arith.constant 0 : index
    %c0_106 = arith.constant 0 : index
    %132 = vector.load %arg9[%c3_104, %c0_105, %c0_106] : memref<4x32x8xf32, #tpu.memory_space<vmem>>, vector<1x32x8xf32>
    %133 = vector.shape_cast %132 : vector<1x32x8xf32> to vector<32x8xf32>
    %cst_107 = arith.constant dense<0.000000e+00> : vector<32x8xf32>
    %134 = tpu.matmul %5, %133, %cst_107 {dimension_numbers = #tpu.dot_dimension_numbers<[1], [0], [0], [1], [0, 0, 1, 1], [], []>} : vector<32x32xf32>, vector<32x8xf32>, vector<32x8xf32> -> vector<32x8xf32>
    %c3_108 = arith.constant 3 : index
    %c0_109 = arith.constant 0 : index
    %c0_110 = arith.constant 0 : index
    %135 = vector.load %arg13[%c3_108, %c0_109, %c0_110] : memref<4x1x8xf32, #tpu.memory_space<vmem>>, vector<1x1x8xf32>
    %136 = vector.shape_cast %135 : vector<1x1x8xf32> to vector<1x8xf32>
    %137 = vector.broadcast %136 : vector<1x8xf32> to vector<32x8xf32>
    %138 = arith.addf %134, %137 : vector<32x8xf32>
    %c3_111 = arith.constant 3 : index
    %c0_112 = arith.constant 0 : index
    %c0_113 = arith.constant 0 : index
    %139 = vector.load %arg10[%c3_111, %c0_112, %c0_113] : memref<4x32x8xf32, #tpu.memory_space<vmem>>, vector<1x32x8xf32>
    %140 = vector.shape_cast %139 : vector<1x32x8xf32> to vector<32x8xf32>
    %cst_114 = arith.constant dense<0.000000e+00> : vector<32x8xf32>
    %141 = tpu.matmul %8, %140, %cst_114 {dimension_numbers = #tpu.dot_dimension_numbers<[1], [0], [0], [1], [0, 0, 1, 1], [], []>} : vector<32x32xf32>, vector<32x8xf32>, vector<32x8xf32> -> vector<32x8xf32>
    %c3_115 = arith.constant 3 : index
    %c0_116 = arith.constant 0 : index
    %c0_117 = arith.constant 0 : index
    %142 = vector.load %arg14[%c3_115, %c0_116, %c0_117] : memref<4x1x8xf32, #tpu.memory_space<vmem>>, vector<1x1x8xf32>
    %143 = vector.shape_cast %142 : vector<1x1x8xf32> to vector<1x8xf32>
    %144 = vector.broadcast %143 : vector<1x8xf32> to vector<32x8xf32>
    %145 = arith.addf %141, %144 : vector<32x8xf32>
    %cst_118 = arith.constant dense<0.000000e+00> : vector<16x32xf32>
    %146 = tpu.matmul %131, %138, %cst_118 {dimension_numbers = #tpu.dot_dimension_numbers<[1], [1], [0], [0], [0, 0, 1, 0], [], []>} : vector<16x8xf32>, vector<32x8xf32>, vector<16x32xf32> -> vector<16x32xf32>
    %147 = arith.addf %146, %9 : vector<16x32xf32>
    %cst_119 = arith.constant dense<0xFF800000> : vector<16xf32>
    %148 = vector.multi_reduction <maximumf>, %147, %cst_119 [1] : vector<16x32xf32> to vector<16xf32>
    %149 = vector.shape_cast %148 : vector<16xf32> to vector<16x1xf32>
    %150 = vector.broadcast %149 : vector<16x1xf32> to vector<16x32xf32>
    %151 = arith.subf %147, %150 : vector<16x32xf32>
    %152 = math.exp %151 : vector<16x32xf32>
    %cst_120 = arith.constant dense<0.000000e+00> : vector<16xf32>
    %153 = vector.multi_reduction <add>, %152, %cst_120 [1] : vector<16x32xf32> to vector<16xf32>
    %154 = vector.shape_cast %153 : vector<16xf32> to vector<16x1xf32>
    %155 = tpu.reciprocal %154 : vector<16x1xf32> -> vector<16x1xf32>
    %156 = vector.broadcast %155 : vector<16x1xf32> to vector<16x32xf32>
    %157 = arith.mulf %152, %156 : vector<16x32xf32>
    %cst_121 = arith.constant dense<0.000000e+00> : vector<16x8xf32>
    %158 = tpu.matmul %157, %145, %cst_121 {dimension_numbers = #tpu.dot_dimension_numbers<[1], [0], [0], [1], [0, 0, 1, 1], [], []>} : vector<16x32xf32>, vector<32x8xf32>, vector<16x8xf32> -> vector<16x8xf32>
    %c3_122 = arith.constant 3 : index
    %c0_123 = arith.constant 0 : index
    %c0_124 = arith.constant 0 : index
    %159 = vector.load %arg11[%c3_122, %c0_123, %c0_124] : memref<4x8x32xf32, #tpu.memory_space<vmem>>, vector<1x8x32xf32>
    %160 = vector.shape_cast %159 : vector<1x8x32xf32> to vector<8x32xf32>
    %cst_125 = arith.constant dense<0.000000e+00> : vector<16x32xf32>
    %161 = tpu.matmul %158, %160, %cst_125 {dimension_numbers = #tpu.dot_dimension_numbers<[1], [0], [0], [1], [0, 0, 1, 1], [], []>} : vector<16x8xf32>, vector<8x32xf32>, vector<16x32xf32> -> vector<16x32xf32>
    %162 = arith.addf %124, %161 : vector<16x32xf32>
    %c0_126 = arith.constant 0 : index
    %c0_127 = arith.constant 0 : index
    %163 = vector.load %arg15[%c0_126, %c0_127] : memref<1x32xf32, #tpu.memory_space<vmem>>, vector<1x32xf32>
    %164 = vector.broadcast %163 : vector<1x32xf32> to vector<16x32xf32>
    %165 = arith.addf %162, %164 : vector<16x32xf32>
    %166 = arith.addf %0, %165 : vector<16x32xf32>
    %cst_128 = arith.constant dense<0.000000e+00> : vector<16xf32>
    %167 = vector.multi_reduction <add>, %166, %cst_128 [1] : vector<16x32xf32> to vector<16xf32>
    %168 = vector.shape_cast %167 : vector<16xf32> to vector<16x1xf32>
    %cst_129 = arith.constant 3.200000e+01 : f32
    %169 = vector.broadcast %cst_129 : f32 to vector<16x1xf32>
    %170 = arith.divf %168, %169 : vector<16x1xf32>
    %171 = vector.broadcast %170 : vector<16x1xf32> to vector<16x32xf32>
    %172 = arith.subf %166, %171 : vector<16x32xf32>
    %173 = arith.mulf %172, %172 : vector<16x32xf32>
    %cst_130 = arith.constant dense<0.000000e+00> : vector<16xf32>
    %174 = vector.multi_reduction <add>, %173, %cst_130 [1] : vector<16x32xf32> to vector<16xf32>
    %175 = vector.shape_cast %174 : vector<16xf32> to vector<16x1xf32>
    %cst_131 = arith.constant 3.200000e+01 : f32
    %176 = vector.broadcast %cst_131 : f32 to vector<16x1xf32>
    %177 = arith.divf %175, %176 : vector<16x1xf32>
    %178 = vector.broadcast %170 : vector<16x1xf32> to vector<16x32xf32>
    %179 = arith.subf %166, %178 : vector<16x32xf32>
    %cst_132 = arith.constant 9.99999974E-6 : f32
    %180 = vector.broadcast %cst_132 : f32 to vector<16x1xf32>
    %181 = arith.addf %177, %180 : vector<16x1xf32>
    %182 = math.rsqrt %181 : vector<16x1xf32>
    %183 = vector.broadcast %182 : vector<16x1xf32> to vector<16x32xf32>
    %184 = arith.mulf %179, %183 : vector<16x32xf32>
    %c0_133 = arith.constant 0 : index
    %c0_134 = arith.constant 0 : index
    %185 = vector.load %arg16[%c0_133, %c0_134] : memref<1x32xf32, #tpu.memory_space<vmem>>, vector<1x32xf32>
    %186 = vector.broadcast %185 : vector<1x32xf32> to vector<16x32xf32>
    %187 = arith.mulf %184, %186 : vector<16x32xf32>
    %c0_135 = arith.constant 0 : index
    %c0_136 = arith.constant 0 : index
    %188 = vector.load %arg17[%c0_135, %c0_136] : memref<1x32xf32, #tpu.memory_space<vmem>>, vector<1x32xf32>
    %189 = vector.broadcast %188 : vector<1x32xf32> to vector<16x32xf32>
    %190 = arith.addf %187, %189 : vector<16x32xf32>
    %c0_137 = arith.constant 0 : index
    %c0_138 = arith.constant 0 : index
    %191 = vector.load %arg18[%c0_137, %c0_138] : memref<16x32xf32, #tpu.memory_space<vmem>>, vector<16x32xf32>
    tpu.vector_store %arg18[%c0_137, %c0_138], %190 {strides = array<i32>} : memref<16x32xf32, #tpu.memory_space<vmem>>, vector<16x32xf32>,
    return
  }
  func.func @transform_0(%arg0: i32) -> (i32, i32) {
    %c0_i32 = arith.constant 0 : i32
    %c0_i32_0 = arith.constant 0 : i32
    %c0_i32_1 = arith.constant 0 : i32
    return %c0_i32, %c0_i32_0 : i32, i32
  }
  func.func @transform_1(%arg0: i32) -> (i32, i32) {
    %c0_i32 = arith.constant 0 : i32
    %c0_i32_0 = arith.constant 0 : i32
    %c0_i32_1 = arith.constant 0 : i32
    return %c0_i32, %c0_i32_0 : i32, i32
  }
  func.func @transform_2(%arg0: i32) -> (i32, i32) {
    %c0_i32 = arith.constant 0 : i32
    %c0_i32_0 = arith.constant 0 : i32
    %c0_i32_1 = arith.constant 0 : i32
    return %c0_i32, %c0_i32_0 : i32, i32
  }
  func.func @transform_3(%arg0: i32) -> (i32, i32) {
    %c0_i32 = arith.constant 0 : i32
    %c0_i32_0 = arith.constant 0 : i32
    %c0_i32_1 = arith.constant 0 : i32
    return %c0_i32, %c0_i32_0 : i32, i32
  }
  func.func @transform_4(%arg0: i32) -> (i32, i32) {
    %c0_i32 = arith.constant 0 : i32
    %c0_i32_0 = arith.constant 0 : i32
    %c0_i32_1 = arith.constant 0 : i32
    return %c0_i32, %c0_i32_0 : i32, i32
  }
  func.func @transform_5(%arg0: i32) -> (i32, i32) {
    %c0_i32 = arith.constant 0 : i32
    %c0_i32_0 = arith.constant 0 : i32
    %c0_i32_1 = arith.constant 0 : i32
    return %c0_i32, %c0_i32_0 : i32, i32
  }
  func.func @transform_6(%arg0: i32) -> (i32, i32) {
    %c0_i32 = arith.constant 0 : i32
    %c0_i32_0 = arith.constant 0 : i32
    %c0_i32_1 = arith.constant 0 : i32
    return %c0_i32, %c0_i32_0 : i32, i32
  }
  func.func @transform_7(%arg0: i32) -> (i32, i32, i32) {
    %c0_i32 = arith.constant 0 : i32
    %c0_i32_0 = arith.constant 0 : i32
    %c0_i32_1 = arith.constant 0 : i32
    %c0_i32_2 = arith.constant 0 : i32
    return %c0_i32, %c0_i32_0, %c0_i32_1 : i32, i32, i32
  }
  func.func @transform_8(%arg0: i32) -> (i32, i32, i32) {
    %c0_i32 = arith.constant 0 : i32
    %c0_i32_0 = arith.constant 0 : i32
    %c0_i32_1 = arith.constant 0 : i32
    %c0_i32_2 = arith.constant 0 : i32
    return %c0_i32, %c0_i32_0, %c0_i32_1 : i32, i32, i32
  }
  func.func @transform_9(%arg0: i32) -> (i32, i32, i32) {
    %c0_i32 = arith.constant 0 : i32
    %c0_i32_0 = arith.constant 0 : i32
    %c0_i32_1 = arith.constant 0 : i32
    %c0_i32_2 = arith.constant 0 : i32
    return %c0_i32, %c0_i32_0, %c0_i32_1 : i32, i32, i32
  }
  func.func @transform_10(%arg0: i32) -> (i32, i32, i32) {
    %c0_i32 = arith.constant 0 : i32
    %c0_i32_0 = arith.constant 0 : i32
    %c0_i32_1 = arith.constant 0 : i32
    %c0_i32_2 = arith.constant 0 : i32
    return %c0_i32, %c0_i32_0, %c0_i32_1 : i32, i32, i32
  }
  func.func @transform_11(%arg0: i32) -> (i32, i32, i32) {
    %c0_i32 = arith.constant 0 : i32
    %c0_i32_0 = arith.constant 0 : i32
    %c0_i32_1 = arith.constant 0 : i32
    %c0_i32_2 = arith.constant 0 : i32
    return %c0_i32, %c0_i32_0, %c0_i32_1 : i32, i32, i32
  }
  func.func @transform_12(%arg0: i32) -> (i32, i32, i32) {
    %c0_i32 = arith.constant 0 : i32
    %c0_i32_0 = arith.constant 0 : i32
    %c0_i32_1 = arith.constant 0 : i32
    %c0_i32_2 = arith.constant 0 : i32
    return %c0_i32, %c0_i32_0, %c0_i32_1 : i32, i32, i32
  }
  func.func @transform_13(%arg0: i32) -> (i32, i32, i32) {
    %c0_i32 = arith.constant 0 : i32
    %c0_i32_0 = arith.constant 0 : i32
    %c0_i32_1 = arith.constant 0 : i32
    %c0_i32_2 = arith.constant 0 : i32
    return %c0_i32, %c0_i32_0, %c0_i32_1 : i32, i32, i32
  }
  func.func @transform_14(%arg0: i32) -> (i32, i32) {
    %c0_i32 = arith.constant 0 : i32
    %c0_i32_0 = arith.constant 0 : i32
    %c0_i32_1 = arith.constant 0 : i32
    return %c0_i32, %c0_i32_0 : i32, i32
  }
  func.func @transform_15(%arg0: i32) -> (i32, i32) {
    %c0_i32 = arith.constant 0 : i32
    %c0_i32_0 = arith.constant 0 : i32
    %c0_i32_1 = arith.constant 0 : i32
    return %c0_i32, %c0_i32_0 : i32, i32
  }
  func.func @transform_16(%arg0: i32) -> (i32, i32) {
    %c0_i32 = arith.constant 0 : i32
    %c0_i32_0 = arith.constant 0 : i32
    %c0_i32_1 = arith.constant 0 : i32
    return %c0_i32, %c0_i32_0 : i32, i32
  }
  func.func @transform_17(%arg0: i32) -> (i32, i32) {
    %c0_i32 = arith.constant 0 : i32
    %c0_i32_0 = arith.constant 0 : i32
    %c0_i32_1 = arith.constant 0 : i32
    return %c0_i32, %c0_i32_0 : i32, i32
  }
}

</mosaic_0001>

<bundles_post_ra>
// kernel: tpu_custom_call.1
= control target key start
LH: loop header
LB: loop body
LE: loop exit
PB: predicated region body
PF: predicated region fallthrough
CT: control target
= control target key end

     0   :  { %s3826_s0 = inlined_call_operand.vmem [shape: f32[16,32], index: 0, kind: input, shape index: {}]   ;;  %s3827_s1 = inlined_call_operand.vmem [shape: f32[16,32], index: 1, kind: input, shape index: {}]   ;;  %s3828_s2 = inlined_call_operand.vmem [shape: f32[32,32], index: 2, kind: input, shape index: {}]   ;;  %s3829_s3 = inlined_call_operand.vmem [shape: f32[32,32], index: 3, kind: input, shape index: {}]   ;;  %s3830_s4 = inlined_call_operand.vmem [shape: f32[32,32], index: 4, kind: input, shape index: {}]   ;;  %s3831_s5 = inlined_call_operand.vmem [shape: f32[32,32], index: 5, kind: input, shape index: {}]   ;;  %s3832_s6 = inlined_call_operand.vmem [shape: f32[16,32], index: 6, kind: input, shape index: {}]   ;;  %s3833_s7 = inlined_call_operand.vmem [shape: f32[4,32,8], index: 7, kind: input, shape index: {}]   ;;  %s3834_s8 = inlined_call_operand.vmem [shape: f32[4,32,8], index: 8, kind: input, shape index: {}]   ;;  %s3835_s9 = inlined_call_operand.vmem [shape: f32[4,32,8], index: 9, kind: input, shape index: {}]   ;;  %s3836_s10 = inlined_call_operand.vmem [shape: f32[4,8,32], index: 10, kind: input, shape index: {}]   ;;  %s3837_s11 = inlined_call_operand.vmem [shape: f32[4,1,8], index: 11, kind: input, shape index: {}]   ;;  %s3838_s12 = inlined_call_operand.vmem [shape: f32[4,1,8], index: 12, kind: input, shape index: {}]   ;;  %s3839_s13 = inlined_call_operand.vmem [shape: f32[4,1,8], index: 13, kind: input, shape index: {}]   ;;  %s3840_s14 = inlined_call_operand.vmem [shape: f32[1,32], index: 14, kind: input, shape index: {}]   ;;  %s3841_s15 = inlined_call_operand.vmem [shape: f32[1,32], index: 15, kind: input, shape index: {}]   ;;  %s3842_s16 = inlined_call_operand.vmem [shape: f32[1,32], index: 16, kind: input, shape index: {}]   ;;  %s3843_s17 = inlined_call_operand.hbm [shape: f32[16,32], index: 17, kind: output, shape index: {}]  }
   0x1   :  { %3846 = sst [smem:[#allocation5_spill]] %s3826_s0 }
   0x2   :  { %3847 = sst [smem:[#allocation6_spill]] %s3827_s1 }
   0x3   :  { %v182_v0 = vld [vmem:[%s3834_s8] sm:$0xff]  ;;  %v183_v1 = vld [vmem:[%s3834_s8 + $0x8] sm:$0xff]  ;;  %v184_v2 = vld [vmem:[%s3834_s8 + $0x10] sm:$0xff]  ;;  %vm100_vm0 = vcmask 261120   ;;  %s3848_s24 = sld [smem:[#allocation5_spill]]  ;;  %s3849_s27 = sld [smem:[#allocation6_spill]] }
   0x4   :  { %v3007_v3 = vpack.c.bf16 %v183_v1, %v182_v0  ;;  %v185_v4 = vld [vmem:[%s3834_s8 + $0x18] sm:$0xff]  ;;  %v63_v5 = vld [vmem:[%s3828_s2] sm:$0xff]  ;;  %v64_v9 = vld [vmem:[%s3828_s2 + $0x8] sm:$0xff] }
   0x5   :  { %v67_v6 = vld [vmem:[%s3829_s3] sm:$0xff]  ;;  %v3011_v7 = vpack.c.bf16 %v185_v4, %v184_v2  ;;  %v68_v10 = vld [vmem:[%s3829_s3 + $0x8] sm:$0xff]  ;;  %v65_v11 = vld [vmem:[%s3828_s2 + $0x10] sm:$0xff] }
   0x6   :  { %v3355_v8 = vadd.f32 %v67_v6, %v63_v5  ;;  %3008 = vmatprep.subr.bf16.mxu1 %v3007_v3  ;;  %v69_v12 = vld [vmem:[%s3829_s3 + $0x10] sm:$0xff]  ;;  %v89_v13 = vld [vmem:[%s3833_s7] sm:$0xff]  ;;  %v90_v14 = vld [vmem:[%s3833_s7 + $0x8] sm:$0xff] }
   0x7   :  { %3010 = vmatpush3.bf16.msra.mxu1 %v3007_v3  ;;  %v91_v15 = vld [vmem:[%s3833_s7 + $0x10] sm:$0xff]  ;;  %v2999_v16 = vpack.c.bf16 %v90_v14, %v89_v13  ;;  %v92_v17 = vld [vmem:[%s3833_s7 + $0x18] sm:$0xff] }
   0x8   :  { %2754 = vmatprep.mubr.msk.f32.mxu1 %vm100_vm0, %v3355_v8  ;;  %3012 = vmatprep.subr.bf16.mxu1 %v3011_v7  ;;  %v3003_v20 = vpack.c.bf16 %v92_v17, %v91_v15 }
   0x9   :  { %v3386_v18 = vld [vmem:[%s3848_s24] sm:$0xff] }
   0xa   :  { %v59_v19 = vld [vmem:[%s3849_s27] sm:$0xff] }
   0xb   :  { %v3392_v21 = vadd.f32 %v59_v19, %v3386_v18 }
   0xc   :  { %22 = vsyncpa [#allocation3], 0  ;;  %v3394_v22 = vadd.f32 %v68_v10, %v64_v9  ;;  %v66_v23 = vld [vmem:[%s3828_s2 + $0x18] sm:$0xff]  ;;  %3000 = vmatprep.subr.bf16.mxu0 %v2999_v16  ;;  %3014 = vmatpush3.bf16.msra.mxu1 %v3011_v7  ;;  %v3399_v24 = vadd.f32 %v69_v12, %v65_v11  ;;  %v3407_v26 = vld [vmem:[%s3848_s24 + $0x8] sm:$0xff]  ;;  %vm398_vm1 = vcmask 64512  }
   0xd   :  { %v70_v25 = vld [vmem:[%s3829_s3 + $0x18] sm:$0xff]  ;;  %3002 = vmatpush3.bf16.msra.mxu0 %v2999_v16  ;;  %v60_v27 = vld [vmem:[%s3849_s27 + $0x8] sm:$0xff]  ;;  %2743 = vmatprep.mubr.msk.f32.mxu0 %vm100_vm0, %v3392_v21  ;;  %v2447_v30 = vld [vmem:[%s3838_s12] ss:$0 sm:$0xff] }
   0xe   :  { %3004 = vmatprep.subr.bf16.mxu0 %v3003_v20  ;;  %v3416_v28 = vadd.f32 %v70_v25, %v66_v23  ;;  %v3419_v29 = vadd.f32 %v60_v27, %v3407_v26  ;;  %vm3432_vm2 = vmpackc.low %vm398_vm1, %vm398_vm1  ;;  %v2444_v36 = vld [vmem:[%s3837_s11] ss:$0 sm:$0xff]  ;;  %v291_v48 = vld [vmem:[%s3835_s9 + $0x8] sm:$0xff] }
   0xf   :  { %2755 = vmatmul.mubr.msk.f32.vlgmr.msra.gmra.mrb[0].mxu1 %vm100_vm0, %v3394_v22  ;;  %v290_v47 = vld [vmem:[%s3835_s9] sm:$0xff]  ;;  %v292_v49 = vld [vmem:[%s3835_s9 + $0x10] sm:$0xff]  ;;  %v293_v51 = vld [vmem:[%s3835_s9 + $0x18] sm:$0xff] }
  0x10   :  { %2757 = vmatprep.mubr.msk.f32.mxu1 %vm100_vm0, %v3399_v24  ;;  %v3015_v50 = vpack.c.bf16 %v291_v48, %v290_v47  ;;  %v75_v52 = vld [vmem:[%s3830_s4] sm:$0xff]  ;;  %v3019_v54 = vpack.c.bf16 %v293_v51, %v292_v49  ;;  %v76_v56 = vld [vmem:[%s3830_s4 + $0x8] sm:$0xff]  ;;  %v77_v58 = vld [vmem:[%s3830_s4 + $0x10] sm:$0xff] }
  0x11   :  { %3006 = vmatpush3.bf16.msra.mxu0 %v3003_v20  ;;  %v79_v53 = vld [vmem:[%s3831_s5] sm:$0xff]  ;;  %v80_v57 = vld [vmem:[%s3831_s5 + $0x8] sm:$0xff]  ;;  %v81_v59 = vld [vmem:[%s3831_s5 + $0x10] sm:$0xff] }
  0x12   :  { %v3469_v55 = vadd.f32 %v79_v53, %v75_v52  ;;  %3016 = vmatprep.subr.bf16.mxu0 %v3015_v50  ;;  %v3485_v60 = vadd.f32 %v80_v57, %v76_v56  ;;  %v3487_v61 = vadd.f32 %v81_v59, %v77_v58  ;;  %v78_v62 = vld [vmem:[%s3830_s4 + $0x18] sm:$0xff]  ;;  %v3506_v1 = vld [vmem:[%s3832_s6] sm:$0xff]  ;;  %v3511_v3 = vld [vmem:[%s3832_s6 + $0x8] sm:$0xff] }
  0x13   :  { %2758 = vmatmul.mubr.msk.f32.gmra.mrb[2].mxu1 %vm100_vm0, %v3416_v28  ;;  %v82_v63 = vld [vmem:[%s3831_s5 + $0x18] sm:$0xff]  ;;  %v2473_v10 = vld [vmem:[%s3834_s8 + $0x20] sm:$0xff]  ;;  %v2474_v11 = vld [vmem:[%s3834_s8 + $0x28] sm:$0xff] }
  0x14   :  { %2744 = vmatmul.mubr.msk.f32.vlgmr.msra.gmra.mrb[0].mxu0 %vm100_vm0, %v3419_v29  ;;  %v3497_v0 = vadd.f32 %v82_v63, %v78_v62  ;;  %v3051_v12 = vpack.c.bf16 %v2474_v11, %v2473_v10  ;;  %v2467_v52 = vld [vmem:[%s3833_s7 + $0x30] sm:$0xff]  ;;  %v2468_v53 = vld [vmem:[%s3833_s7 + $0x38] sm:$0xff]  ;;  %v2478_v58 = vld [vmem:[%s3838_s12 + $0x1] ss:$0 sm:$0xff] }
  0x15   :  { %3018 = vmatpush3.bf16.msra.mxu0 %v3015_v50  ;;  %2768 = vmatprep.mubr.msk.f32.mxu0 %vm100_vm0, %v3469_v55  ;;  %v3047_v57 = vpack.c.bf16 %v2468_v53, %v2467_v52  ;;  %v2566_v35 = vld [vmem:[%s3835_s9 + $0x78] sm:$0xff] }
  0x16   :  { %3020 = vmatprep.subr.bf16.mxu0 %v3019_v54 }
  0x19   :  { %3022 = vmatpush3.bf16.msra.mxu0 %v3019_v54 }
  0x1c   :  { %2769 = vmatmul.mubr.msk.f32.vlgmr.msra.gmra.mrb[2].mxu0 %vm100_vm0, %v3485_v60 }
  0x1d   :  { %2771 = vmatprep.mubr.msk.f32.mxu0 %vm100_vm0, %v3487_v61 }
  0x20   :  { %2772 = vmatmul.mubr.msk.f32.gmra.mrb[4].mxu0 %vm100_vm0, %v3497_v0 }
  0xe2   :  { %v2756_v31 = vpop.f32.mrb[0].mxu1 }
  0xe3   :  { %v277_v32 = vadd.f32 %v2756_v31, %v2447_v30  ;;  %v271_v33 = vpop.f32.mrb[1].mxu1  ;;  %v2476_v31 = vld [vmem:[%s3834_s8 + $0x38] sm:$0xff] }
  0xe4   :  { %v272_v34 = vadd.f32 %v2447_v30, %v271_v33 }
  0xe6   :  { %v3023_v37 = vpack.c.bf16 %v277_v32, %v272_v34  ;;  %v2759_v38 = vpop.f32.mrb[2].mxu1  ;;  %v2452_v34 = vld [vmem:[%s3839_s13] ss:$0 sm:$0xff] }
  0xe7   :  { %v2745_v39 = vpop.f32.mrb[0].mxu0  ;;  %v287_v40 = vadd.f32 %v2759_v38, %v2447_v30  ;;  %v281_v41 = vpop.f32.mrb[3].mxu1 }
  0xe8   :  { %v173_v42 = vpop.f32.mrb[1].mxu0  ;;  %3025 = vmatprep.subr.msk.bf16.mxu1 %vm3432_vm2, %v3023_v37  ;;  %v282_v43 = vadd.f32 %v2447_v30, %v281_v41  ;;  %v179_v46 = vadd.f32 %v2745_v39, %v2444_v36  ;;  %v2475_v30 = vld [vmem:[%s3834_s8 + $0x30] sm:$0xff] }
  0xe9   :  { %v174_v44 = vadd.f32 %v2444_v36, %v173_v42  ;;  %3028 = vmatpush3.bf16.xpose.msk.msra.mxu1 %vm3432_vm2, %v3023_v37  ;;  %v3055_v32 = vpack.c.bf16 %v2476_v31, %v2475_v30 }
  0xea   :  { %v3029_v45 = vpack.c.bf16 %v287_v40, %v282_v43 }
  0xeb   :  { %2782 = vmatprep.mubr.msk.f32.mxu1 %vm398_vm1, %v174_v44 }
  0xec   :  { %3031 = vmatprep.subr.msk.bf16.mxu1 %vm3432_vm2, %v3029_v45 }
  0xef   :  { %v2770_v33 = vpop.f32.mrb[2].mxu0 }
  0xf0   :  { %v385_v36 = vadd.f32 %v2770_v33, %v2452_v34  ;;  %v379_v37 = vpop.f32.mrb[3].mxu0 }
  0xf1   :  { %3034 = vmatpush3.bf16.xpose.msk.msra.mxu1 %vm3432_vm2, %v3029_v45  ;;  %v380_v38 = vadd.f32 %v2452_v34, %v379_v37  ;;  %v2465_v45 = vld [vmem:[%s3833_s7 + $0x20] sm:$0xff] }
  0xf2   :  { %3052 = vmatprep.subr.bf16.mxu1 %v3051_v12 }
  0xf3   :  { %v3035_v39 = vpack.c.bf16 %v385_v36, %v380_v38  ;;  %v2773_v40 = vpop.f32.mrb[4].mxu0  ;;  %v2488_v38 = vld [vmem:[%s3839_s13 + $0x1] ss:$0 sm:$0xff] }
  0xf4   :  { %v389_v41 = vpop.f32.mrb[5].mxu0  ;;  %v395_v42 = vadd.f32 %v2773_v40, %v2452_v34 }
  0xf5   :  { %v390_v43 = vadd.f32 %v2452_v34, %v389_v41  ;;  %3036 = vmatprep.subr.bf16.mxu0 %v3035_v39 }
  0xf6   :  { %3038 = vmatpush3.bf16.msra.mxu0 %v3035_v39 }
  0xf7   :  { %v3039_v44 = vpack.c.bf16 %v395_v42, %v390_v43 }
  0xf8   :  { %2783 = vmatmul.mubr.msk.f32.vlgmr.msra.gmra.mrb[4].mxu1 %vm398_vm1, %v179_v46  ;;  %v2466_v46 = vld [vmem:[%s3833_s7 + $0x28] sm:$0xff] }
  0xf9   :  { %2815 = vmatprep.mubr.msk.f32.mxu1 %vm100_vm0, %v3355_v8  ;;  %3054 = vmatpush3.bf16.msra.mxu1 %v3051_v12  ;;  %v3043_v47 = vpack.c.bf16 %v2466_v46, %v2465_v45 }
  0xfa   :  { %3056 = vmatprep.subr.bf16.mxu1 %v3055_v32  ;;  %3040 = vmatprep.subr.bf16.mxu0 %v3039_v44 }
  0xfb   :  { %3042 = vmatpush3.bf16.msra.mxu0 %v3039_v44 }
  0xfc   :  { %3044 = vmatprep.subr.bf16.mxu0 %v3043_v47 }
  0xfd   :  { %3058 = vmatpush3.bf16.msra.mxu1 %v3055_v32 }
 0x100   :  { %2816 = vmatmul.mubr.msk.f32.vlgmr.msra.gmra.mrb[6].mxu1 %vm100_vm0, %v3394_v22 }
 0x101   :  { %2818 = vmatprep.mubr.msk.f32.mxu1 %vm100_vm0, %v3399_v24 }
 0x104   :  { %2819 = vmatmul.mubr.msk.f32.gmra.mrb[8].mxu1 %vm100_vm0, %v3416_v28 }
 0x1cb   :  { %v2784_v2 = vpop.f32.mrb[4].mxu1 }
 0x1cc   :  { %v483_v4 = vpop.f32.mrb[5].mxu1  ;;  %v489_v6 = vadd.f32 %v2784_v2, %v3511_v3 }
 0x1cd   :  { %v484_v5 = vadd.f32 %v483_v4, %v3506_v1 }
 0x1ce   :  { %v495_v9 = vsel %vm100_vm0, %v489_v6, -inf }
 0x1cf   :  { %v492_v7 = vsel %vm100_vm0, %v484_v5, -inf }
 0x1d0   :  { %493 = vmax.xlane.f32.xlu0 %v492_v7 }
 0x1d3   :  { %v2817_v59 = vpop.f32.mrb[6].mxu1 }
 0x1d4   :  { %496 = vmax.xlane.f32.xlu0 %v495_v9  ;;  %v769_v62 = vadd.f32 %v2817_v59, %v2478_v58  ;;  %v763_v63 = vpop.f32.mrb[7].mxu1 }
 0x1d5   :  { %v764_v2 = vadd.f32 %v2478_v58, %v763_v63 }
 0x1d7   :  { %v3067_v4 = vpack.c.bf16 %v769_v62, %v764_v2  ;;  %v2501_v62 = vld [vmem:[%s3836_s10 + $0x8] sm:$0xff] }
 0x1d9   :  { %3069 = vmatprep.subr.msk.bf16.mxu1 %vm3432_vm2, %v3067_v4 }
 0x1da   :  { %3072 = vmatpush3.bf16.xpose.msk.msra.mxu1 %vm3432_vm2, %v3067_v4 }
 0x25d   :  { %v494_v13 = vpop.xlane.xlu0 %493 }
 0x25e   :  { %v498_v14 = vsub.f32 %v484_v5, %v494_v13  ;;  %v2820_v5 = vpop.f32.mrb[8].mxu1  ;;  %v2470_v13 = vld [vmem:[%s3837_s11 + $0x1] ss:$0 sm:$0xff] }
 0x25f   :  { %v773_v7 = vpop.f32.mrb[9].mxu1 }
 0x260   :  { %v500_v15 = vmul.f32 1.442695, %v498_v14  ;;  %v774_v9 = vadd.f32 %v2478_v58, %v773_v7 }
 0x261   :  { %v497_v16 = vpop.xlane.xlu0 %496 }
 0x262   :  { %3184 = vpow2.f32 %v500_v15  ;;  %v499_v17 = vsub.f32 %v489_v6, %v497_v16  ;;  %v779_v6 = vadd.f32 %v2820_v5, %v2478_v58 }
 0x264   :  { %v502_v19 = vmul.f32 1.442695, %v499_v17  ;;  %v3073_v10 = vpack.c.bf16 %v779_v6, %v774_v9  ;;  %v595_v9 = vld [vmem:[%s3836_s10] sm:$0xff] }
 0x266   :  { %3186 = vpow2.f32 %v502_v19  ;;  %3075 = vmatprep.subr.msk.bf16.mxu1 %vm3432_vm2, %v3073_v10  ;;  %v2483_v19 = vld [vmem:[%s3835_s9 + $0x20] sm:$0xff] }
 0x267   :  { %3078 = vmatpush3.bf16.xpose.msk.msra.mxu1 %vm3432_vm2, %v3073_v10  ;;  %v2506_v10 = vld [vmem:[%s3833_s7 + $0x40] sm:$0xff] }
 0x26c   :  { %v3185_v20 = vpop.eup %3184 }
 0x26d   :  { %v504_v23 = vsel %vm100_vm0, %v3185_v20, 0.0 }
 0x26e   :  { %505 = vadd.xlane.f32.xlu1 %v504_v23  ;;  %v2485_v23 = vld [vmem:[%s3835_s9 + $0x30] sm:$0xff] }
 0x270   :  { %v3187_v25 = vpop.eup %3186 }
 0x271   :  { %v507_v27 = vsel %vm100_vm0, %v3187_v25, 0.0 }
 0x272   :  { %508 = vadd.xlane.f32.xlu1 %v507_v27  ;;  %v2486_v27 = vld [vmem:[%s3835_s9 + $0x38] sm:$0xff] }
 0x273   :  { %v3063_v30 = vpack.c.bf16 %v2486_v27, %v2485_v23 }
 0x2fb   :  { %v506_v48 = vpop.xlane.xlu1 %505 }
 0x2fc   :  { %3188 = vrcp.f32 %v506_v48 }
 0x2ff   :  { %v509_v49 = vpop.xlane.xlu1 %508 }
 0x300   :  { %3190 = vrcp.f32 %v509_v49 }
 0x306   :  { %v3189_v50 = vpop.eup %3188 }
 0x307   :  { %v512_v51 = vmul.f32 %v3189_v50, %v3185_v20  ;;  %v2484_v20 = vld [vmem:[%s3835_s9 + $0x28] sm:$0xff] }
 0x309   :  { %2793 = vmatprep.mubr.msk.f32.mxu0 %vm100_vm0, %v512_v51 }
 0x30a   :  { %v3191_v54 = vpop.eup %3190 }
 0x30b   :  { %v513_v56 = vmul.f32 %v3191_v54, %v3187_v25  ;;  %v3059_v25 = vpack.c.bf16 %v2484_v20, %v2483_v19  ;;  %v2514_v19 = vld [vmem:[%s3834_s8 + $0x40] sm:$0xff]  ;;  %v2515_v20 = vld [vmem:[%s3834_s8 + $0x48] sm:$0xff] }
 0x30c   :  { %v3095_v27 = vpack.c.bf16 %v2515_v20, %v2514_v19 }
 0x30d   :  { %2794 = vmatmul.mubr.msk.f32.vlgmr.msra.gmra.mrb[6].mxu0 %vm100_vm0, %v513_v56 }
 0x30e   :  { %3046 = vmatpush3.bf16.msra.mxu0 %v3043_v47  ;;  %2804 = vmatprep.mubr.msk.f32.mxu0 %vm100_vm0, %v3392_v21 }
 0x30f   :  { %3048 = vmatprep.subr.bf16.mxu0 %v3047_v57 }
 0x312   :  { %3050 = vmatpush3.bf16.msra.mxu0 %v3047_v57 }
 0x313   :  { %3060 = vmatprep.subr.bf16.mxu0 %v3059_v25 }
 0x315   :  { %2805 = vmatmul.mubr.msk.f32.vlgmr.msra.gmra.mrb[8].mxu0 %vm100_vm0, %v3419_v29 }
 0x316   :  { %2829 = vmatprep.mubr.msk.f32.mxu0 %vm100_vm0, %v3469_v55  ;;  %3062 = vmatpush3.bf16.msra.mxu0 %v3059_v25 }
 0x317   :  { %3064 = vmatprep.subr.bf16.mxu0 %v3063_v30 }
 0x31a   :  { %3066 = vmatpush3.bf16.msra.mxu0 %v3063_v30  ;;  %v2516_v30 = vld [vmem:[%s3834_s8 + $0x50] sm:$0xff] }
 0x31d   :  { %2830 = vmatmul.mubr.msk.f32.vlgmr.msra.gmra.mrb[10].mxu0 %vm100_vm0, %v3485_v60 }
 0x31e   :  { %2832 = vmatprep.mubr.msk.f32.mxu0 %vm100_vm0, %v3487_v61 }
 0x321   :  { %2833 = vmatmul.mubr.msk.f32.gmra.mrb[12].mxu0 %vm100_vm0, %v3497_v0 }
 0x3e0   :  { %v3571_v11 = vpop.f32.mrb[6].mxu0 }
 0x3e1   :  { %v3573_v12 = vpop.f32.mrb[7].mxu0 }
 0x3e8   :  { %v2806_v14 = vpop.f32.mrb[8].mxu0 }
 0x3e9   :  { %v675_v15 = vpop.f32.mrb[9].mxu0  ;;  %v681_v17 = vadd.f32 %v2806_v14, %v2470_v13  ;;  %v2508_v14 = vld [vmem:[%s3833_s7 + $0x50] sm:$0xff] }
 0x3ea   :  { %v676_v16 = vadd.f32 %v2470_v13, %v675_v15  ;;  %v2507_v13 = vld [vmem:[%s3833_s7 + $0x48] sm:$0xff] }
 0x3eb   :  { %v3087_v15 = vpack.c.bf16 %v2507_v13, %v2506_v10 }
 0x3ec   :  { %2843 = vmatprep.mubr.msk.f32.mxu1 %vm398_vm1, %v676_v16  ;;  %v2509_v16 = vld [vmem:[%s3833_s7 + $0x58] sm:$0xff] }
 0x3ed   :  { %2844 = vmatmul.mubr.msk.f32.vlgmr.msra.gmra.mrb[10].mxu1 %vm398_vm1, %v681_v17  ;;  %v3091_v17 = vpack.c.bf16 %v2509_v16, %v2508_v14  ;;  %3088 = vmatprep.subr.bf16.mxu1 %v3087_v15 }
 0x3ee   :  { %2875 = vmatprep.mubr.msk.f32.mxu1 %vm100_vm0, %v3392_v21  ;;  %3090 = vmatpush3.bf16.msra.mxu1 %v3087_v15 }
 0x3ef   :  { %3092 = vmatprep.subr.bf16.mxu1 %v3091_v17 }
 0x3f0   :  { %v2831_v39 = vpop.f32.mrb[10].mxu0 }
 0x3f1   :  { %v867_v40 = vadd.f32 %v2831_v39, %v2488_v38  ;;  %v861_v41 = vpop.f32.mrb[11].mxu0 }
 0x3f2   :  { %v862_v42 = vadd.f32 %v2488_v38, %v861_v41  ;;  %3094 = vmatpush3.bf16.msra.mxu1 %v3091_v17 }
 0x3f4   :  { %v3079_v43 = vpack.c.bf16 %v867_v40, %v862_v42  ;;  %v2834_v54 = vpop.f32.mrb[12].mxu0 }
 0x3f5   :  { %v871_v56 = vpop.f32.mrb[13].mxu0  ;;  %v877_v57 = vadd.f32 %v2834_v54, %v2488_v38  ;;  %2876 = vmatmul.mubr.msk.f32.vlgmr.msra.gmra.mrb[12].mxu1 %vm100_vm0, %v3419_v29 }
 0x3f6   :  { %3080 = vmatprep.subr.bf16.mxu0 %v3079_v43  ;;  %v872_v58 = vadd.f32 %v2488_v38, %v871_v56  ;;  %2900 = vmatprep.mubr.msk.f32.mxu1 %vm100_vm0, %v3469_v55 }
 0x3f7   :  { %3082 = vmatpush3.bf16.msra.mxu0 %v3079_v43 }
 0x3f8   :  { %v3083_v59 = vpack.c.bf16 %v877_v57, %v872_v58 }
 0x3fa   :  { %3084 = vmatprep.subr.bf16.mxu0 %v3083_v59 }
 0x3fb   :  { %3086 = vmatpush3.bf16.msra.mxu0 %v3083_v59 }
 0x3fc   :  { %2857 = vmatprep.subr.mxu0 %v2501_v62 }
 0x4c0   :  { %v2845_v31 = vpop.f32.mrb[10].mxu1 }
 0x4c1   :  { %v970_v32 = vadd.f32 %v2845_v31, %v3511_v3  ;;  %v964_v33 = vpop.f32.mrb[11].mxu1  ;;  %v2517_v31 = vld [vmem:[%s3834_s8 + $0x58] sm:$0xff] }
 0x4c2   :  { %v965_v34 = vadd.f32 %v964_v33, %v3506_v1 }
 0x4c3   :  { %v976_v36 = vsel %vm100_vm0, %v970_v32, -inf }
 0x4c4   :  { %977 = vmax.xlane.f32.xlu1 %v976_v36  ;;  %v973_v37 = vsel %vm100_vm0, %v965_v34, -inf }
 0x4c5   :  { %974 = vmax.xlane.f32.xlu0 %v973_v37  ;;  %v2519_v37 = vld [vmem:[%s3838_s12 + $0x2] ss:$0 sm:$0xff] }
 0x551   :  { %v978_v44 = vpop.xlane.xlu1 %977 }
 0x552   :  { %v980_v45 = vsub.f32 %v970_v32, %v978_v44  ;;  %v975_v46 = vpop.xlane.xlu0 %974  ;;  %v3099_v32 = vpack.c.bf16 %v2517_v31, %v2516_v30 }
 0x553   :  { %v979_v47 = vsub.f32 %v965_v34, %v975_v46 }
 0x554   :  { %v983_v48 = vmul.f32 1.442695, %v980_v45 }
 0x555   :  { %v981_v49 = vmul.f32 1.442695, %v979_v47 }
 0x556   :  { %3192 = vpow2.f32 %v983_v48  ;;  %v2524_v48 = vld [vmem:[%s3835_s9 + $0x40] sm:$0xff] }
 0x557   :  { %3194 = vpow2.f32 %v981_v49  ;;  %v2525_v49 = vld [vmem:[%s3835_s9 + $0x48] sm:$0xff] }
 0x560   :  { %v3193_v50 = vpop.eup %3192 }
 0x561   :  { %v3195_v51 = vpop.eup %3194  ;;  %v988_v52 = vsel %vm100_vm0, %v3193_v50, 0.0 }
 0x562   :  { %989 = vadd.xlane.f32.xlu1 %v988_v52  ;;  %v985_v53 = vsel %vm100_vm0, %v3195_v51, 0.0  ;;  %v2527_v52 = vld [vmem:[%s3835_s9 + $0x58] sm:$0xff] }
 0x563   :  { %986 = vadd.xlane.f32.xlu0 %v985_v53 }
 0x5ef   :  { %v990_v63 = vpop.xlane.xlu1 %989 }
 0x5f0   :  { %3196 = vrcp.f32 %v990_v63  ;;  %v987_v2 = vpop.xlane.xlu0 %986  ;;  %v2529_v63 = vld [vmem:[%s3839_s13 + $0x2] ss:$0 sm:$0xff] }
 0x5f1   :  { %3198 = vrcp.f32 %v987_v2 }
 0x5fa   :  { %v3197_v4 = vpop.eup %3196 }
 0x5fb   :  { %v3199_v5 = vpop.eup %3198  ;;  %v994_v7 = vmul.f32 %v3197_v4, %v3193_v50  ;;  %v2526_v50 = vld [vmem:[%s3835_s9 + $0x50] sm:$0xff] }
 0x5fc   :  { %v993_v6 = vmul.f32 %v3199_v5, %v3195_v51  ;;  %v3103_v51 = vpack.c.bf16 %v2525_v49, %v2524_v48  ;;  %v3107_v53 = vpack.c.bf16 %v2527_v52, %v2526_v50  ;;  %v2556_v48 = vld [vmem:[%s3834_s8 + $0x78] sm:$0xff] }
 0x5fe   :  { %2854 = vmatprep.mubr.msk.f32.mxu0 %vm100_vm0, %v993_v6  ;;  %3104 = vmatprep.subr.bf16.mxu1 %v3103_v51 }
 0x5ff   :  { %2855 = vmatmul.mubr.msk.f32.vlgmr.msra.gmra.mrb[14].mxu0 %vm100_vm0, %v994_v7  ;;  %3106 = vmatpush3.bf16.msra.mxu1 %v3103_v51  ;;  %v2558_v51 = vld [vmem:[%s3838_s12 + $0x3] ss:$0 sm:$0xff] }
 0x600   :  { %2858 = vmatpush3.msra.mxu0 %v2501_v62  ;;  %3108 = vmatprep.subr.bf16.mxu1 %v3107_v53 }
 0x601   :  { %2862 = vmatprep.subr.mxu0 %v595_v9 }
 0x603   :  { %3110 = vmatpush3.bf16.msra.mxu1 %v3107_v53 }
 0x606   :  { %2901 = vmatmul.mubr.msk.f32.vlgmr.msra.gmra.mrb[14].mxu1 %vm100_vm0, %v3485_v60 }
 0x607   :  { %2903 = vmatprep.mubr.msk.f32.mxu1 %vm100_vm0, %v3487_v61 }
 0x60a   :  { %2904 = vmatmul.mubr.msk.f32.gmra.mrb[16].mxu1 %vm100_vm0, %v3497_v0 }
 0x6d2   :  { %v2856_v23 = vpop.f32.mrb[14].mxu0 }
 0x6d3   :  { %v1067_v25 = vpop.f32.mrb[15].mxu0 }
 0x6d4   :  { %2859 = vmatprep.mubr.msk.f32.mxu0 %vm398_vm1, %v1067_v25 }
 0x6d5   :  { %2860 = vmatmul.mubr.msk.f32.vlgmr.msra.gmra.mrb[16].mxu0 %vm398_vm1, %v2856_v23 }
 0x6d6   :  { %2863 = vmatpush3.msra.mxu0 %v595_v9  ;;  %2864 = vmatprep.mubr.msk.f32.mxu0 %vm398_vm1, %v3573_v12  ;;  %v2877_v12 = vpop.f32.mrb[12].mxu1 }
 0x6d7   :  { %3096 = vmatprep.subr.bf16.mxu0 %v3095_v27  ;;  %v1319_v34 = vpop.f32.mrb[13].mxu1 }
 0x6d9   :  { %v2902_v2 = vpop.f32.mrb[14].mxu1 }
 0x6da   :  { %v1511_v4 = vadd.f32 %v2902_v2, %v2529_v63  ;;  %v1505_v5 = vpop.f32.mrb[15].mxu1 }
 0x6db   :  { %v1506_v6 = vadd.f32 %v2529_v63, %v1505_v5  ;;  %v2564_v5 = vld [vmem:[%s3835_s9 + $0x68] sm:$0xff] }
 0x6dd   :  { %2865 = vmatmul.mubr.msk.f32.vlgmr.msra.gmra.mrb[16].mxu0 %vm398_vm1, %v3571_v11  ;;  %v2511_v11 = vld [vmem:[%s3837_s11 + $0x2] ss:$0 sm:$0xff]  ;;  %v3123_v7 = vpack.c.bf16 %v1511_v4, %v1506_v6  ;;  %v2905_v25 = vpop.f32.mrb[16].mxu1  ;;  %v2565_v6 = vld [vmem:[%s3835_s9 + $0x70] sm:$0xff] }
 0x6de   :  { %3098 = vmatpush3.bf16.msra.mxu0 %v3095_v27  ;;  %2886 = vmatprep.mubr.msk.f32.mxu0 %vm100_vm0, %v3355_v8  ;;  %v1325_v33 = vadd.f32 %v2877_v12, %v2511_v11  ;;  %v1320_v36 = vadd.f32 %v2511_v11, %v1319_v34  ;;  %v1515_v27 = vpop.f32.mrb[17].mxu1  ;;  %v1521_v30 = vadd.f32 %v2905_v25, %v2529_v63  ;;  %v2545_v12 = vld [vmem:[%s3833_s7 + $0x60] sm:$0xff]  ;;  %v2546_v11 = vld [vmem:[%s3833_s7 + $0x68] sm:$0xff] }
 0x6df   :  { %3100 = vmatprep.subr.bf16.mxu0 %v3099_v32  ;;  %3124 = vmatprep.subr.bf16.mxu1 %v3123_v7  ;;  %v1516_v31 = vadd.f32 %v2529_v63, %v1515_v27  ;;  %v2563_v4 = vld [vmem:[%s3835_s9 + $0x60] sm:$0xff] }
 0x6e0   :  { %3126 = vmatpush3.bf16.msra.mxu1 %v3123_v7  ;;  %v3147_v7 = vpack.c.bf16 %v2564_v5, %v2563_v4 }
 0x6e2   :  { %3102 = vmatpush3.bf16.msra.mxu0 %v3099_v32  ;;  %v3127_v32 = vpack.c.bf16 %v1521_v30, %v1516_v31  ;;  %v2568_v31 = vld [vmem:[%s3839_s13 + $0x3] ss:$0 sm:$0xff] }
 0x6e4   :  { %3128 = vmatprep.subr.bf16.mxu1 %v3127_v32 }
 0x6e5   :  { %2887 = vmatmul.mubr.msk.f32.vlgmr.msra.gmra.mrb[18].mxu0 %vm100_vm0, %v3394_v22  ;;  %3130 = vmatpush3.bf16.msra.mxu1 %v3127_v32 }
 0x6e6   :  { %2889 = vmatprep.mubr.msk.f32.mxu0 %vm100_vm0, %v3399_v24 }
 0x6e9   :  { %2890 = vmatmul.mubr.msk.f32.gmra.mrb[20].mxu0 %vm100_vm0, %v3416_v28 }
 0x6ea   :  { %2914 = vmatprep.mubr.msk.f32.mxu0 %vm398_vm1, %v1320_v36 }
 0x7b8   :  { %v2888_v38 = vpop.f32.mrb[18].mxu0 }
 0x7b9   :  { %v1413_v39 = vadd.f32 %v2888_v38, %v2519_v37  ;;  %v1407_v40 = vpop.f32.mrb[19].mxu0  ;;  %v2547_v38 = vld [vmem:[%s3833_s7 + $0x70] sm:$0xff] }
 0x7ba   :  { %v1408_v41 = vadd.f32 %v2519_v37, %v1407_v40 }
 0x7bc   :  { %v3111_v42 = vpack.c.bf16 %v1413_v39, %v1408_v41  ;;  %v2891_v43 = vpop.f32.mrb[20].mxu0  ;;  %v2548_v39 = vld [vmem:[%s3833_s7 + $0x78] sm:$0xff]  ;;  %s3244_s7 = smov [#allocation2]  }
 0x7bd   :  { %v1423_v44 = vadd.f32 %v2891_v43, %v2519_v37  ;;  %v1417_v45 = vpop.f32.mrb[21].mxu0  ;;  %v3135_v43 = vpack.c.bf16 %v2548_v39, %v2547_v38  ;;  %s2433_s4 = sshll.u32 %s3244_s7, 4  ;;  %s2434_s4 = int_to_ptr.vmem [resolvable:$true] %s2433_s4 }
 0x7be   :  { %3113 = vmatprep.subr.msk.bf16.mxu0 %vm3432_vm2, %v3111_v42  ;;  %v1418_v46 = vadd.f32 %v2519_v37, %v1417_v45  ;;  %v2554_v45 = vld [vmem:[%s3834_s8 + $0x68] sm:$0xff]  ;;  %s3220_s18 = scalar_lea.vmem %s2434_s4, 256  ;;  %p3225_p1 = scmp.lt.s32.totalorder %s2434_s4, %s2434_s4 }
 0x7bf   :  { %3116 = vmatpush3.bf16.xpose.msk.msra.mxu0 %vm3432_vm2, %v3111_v42  ;;  %p3221_p0 = scmp.ne.s32.totalorder %s2434_s4, %s3220_s18  ;;  %p3226_p2 = scmp.lt.s32.totalorder %s3220_s18, %s3220_s18 }
 0x7c0   :  { %v3117_v47 = vpack.c.bf16 %v1423_v44, %v1418_v46  ;;  %v2553_v44 = vld [vmem:[%s3834_s8 + $0x60] sm:$0xff] }
 0x7c1   :  { %v3139_v46 = vpack.c.bf16 %v2554_v45, %v2553_v44  ;;  %p3227_p3 = por %p3226_p2, %p3225_p1 }
 0x7c2   :  { %3119 = vmatprep.subr.msk.bf16.mxu0 %vm3432_vm2, %v3117_v47 }
 0x7c3   :  { %p3228_p4 = pnand %p3227_p3, %p3221_p0 }
 0x7c7   :  { %3122 = vmatpush3.bf16.xpose.msk.msra.mxu0 %vm3432_vm2, %v3117_v47  ;;  %v2555_v47 = vld [vmem:[%s3834_s8 + $0x70] sm:$0xff] }
 0x7c8   :  { %v3143_v49 = vpack.c.bf16 %v2556_v48, %v2555_v47 }
 0x7ce   :  { %2915 = vmatmul.mubr.msk.f32.vlgmr.msra.gmra.mrb[22].mxu0 %vm398_vm1, %v1325_v33  ;;  %v3131_v33 = vpack.c.bf16 %v2546_v11, %v2545_v12 }
 0x7d0   :  { %3132 = vmatprep.subr.bf16.mxu1 %v3131_v33 }
 0x8a1   :  { %v2916_v54 = vpop.f32.mrb[22].mxu0 }
 0x8a2   :  { %v1614_v56 = vadd.f32 %v2916_v54, %v3511_v3  ;;  %v1608_v57 = vpop.f32.mrb[23].mxu0 }
 0x8a3   :  { %v1609_v58 = vadd.f32 %v1608_v57, %v3506_v1 }
 0x8a4   :  { %v1620_v59 = vsel %vm100_vm0, %v1614_v56, -inf }
 0x8a5   :  { %1621 = vmax.xlane.f32.xlu1 %v1620_v59  ;;  %v1617_v62 = vsel %vm100_vm0, %v1609_v58, -inf }
 0x8a6   :  { %1618 = vmax.xlane.f32.xlu0 %v1617_v62 }
 0x932   :  { %v1622_v9 = vpop.xlane.xlu1 %1621 }
 0x933   :  { %v1624_v10 = vsub.f32 %v1614_v56, %v1622_v9  ;;  %v1619_v13 = vpop.xlane.xlu0 %1618  ;;  %v3151_v9 = vpack.c.bf16 %v2566_v35, %v2565_v6  ;;  %v2585_v35 = vld [vmem:[%s3841_s15] ss:$0 sm:$0xff] }
 0x934   :  { %v1623_v14 = vsub.f32 %v1609_v58, %v1619_v13 }
 0x935   :  { %v1627_v15 = vmul.f32 1.442695, %v1624_v10 }
 0x936   :  { %v1625_v16 = vmul.f32 1.442695, %v1623_v14 }
 0x937   :  { %3200 = vpow2.f32 %v1627_v15 }
 0x938   :  { %3202 = vpow2.f32 %v1625_v16 }
 0x941   :  { %v3201_v17 = vpop.eup %3200 }
 0x942   :  { %v3203_v19 = vpop.eup %3202  ;;  %v1632_v20 = vsel %vm100_vm0, %v3201_v17, 0.0 }
 0x943   :  { %1633 = vadd.xlane.f32.xlu1 %v1632_v20  ;;  %v1629_v23 = vsel %vm100_vm0, %v3203_v19, 0.0 }
 0x944   :  { %1630 = vadd.xlane.f32.xlu0 %v1629_v23 }
 0x9d0   :  { %v1634_v34 = vpop.xlane.xlu1 %1633 }
 0x9d1   :  { %3204 = vrcp.f32 %v1634_v34  ;;  %v1631_v36 = vpop.xlane.xlu0 %1630 }
 0x9d2   :  { %3206 = vrcp.f32 %v1631_v36 }
 0x9db   :  { %v3205_v37 = vpop.eup %3204 }
 0x9dc   :  { %v3207_v40 = vpop.eup %3206  ;;  %v1638_v42 = vmul.f32 %v3205_v37, %v3201_v17 }
 0x9dd   :  { %v1637_v41 = vmul.f32 %v3207_v40, %v3203_v19  ;;  %v2581_v40 = vld [vmem:[%s3836_s10 + $0x18] sm:$0xff] }
 0x9df   :  { %2925 = vmatprep.mubr.msk.f32.mxu1 %vm100_vm0, %v1637_v41 }
 0x9e0   :  { %2926 = vmatmul.mubr.msk.f32.vlgmr.msra.gmra.mrb[18].mxu1 %vm100_vm0, %v1638_v42 }
 0x9e1   :  { %3134 = vmatpush3.bf16.msra.mxu1 %v3131_v33  ;;  %2941 = vmatprep.mubr.msk.f32.mxu1 %vm100_vm0, %v3392_v21  ;;  %v2542_v21 = vld [vmem:[%s3836_s10 + $0x10] sm:$0xff] }
 0x9e2   :  { %3136 = vmatprep.subr.bf16.mxu1 %v3135_v43  ;;  %2928 = vmatprep.subr.mxu0 %v2542_v21 }
 0x9e3   :  { %2929 = vmatpush3.msra.mxu0 %v2542_v21 }
 0x9e4   :  { %3148 = vmatprep.subr.bf16.mxu0 %v3147_v7 }
 0x9e5   :  { %3138 = vmatpush3.bf16.msra.mxu1 %v3135_v43 }
 0x9e6   :  { %3140 = vmatprep.subr.bf16.mxu1 %v3139_v46 }
 0x9e8   :  { %2942 = vmatmul.mubr.msk.f32.vlgmr.msra.gmra.mrb[20].mxu1 %vm100_vm0, %v3419_v29 }
 0x9e9   :  { %3142 = vmatpush3.bf16.msra.mxu1 %v3139_v46  ;;  %2952 = vmatprep.mubr.msk.f32.mxu1 %vm100_vm0, %v3355_v8  ;;  %v2550_v8 = vld [vmem:[%s3837_s11 + $0x3] ss:$0 sm:$0xff] }
 0x9ea   :  { %3144 = vmatprep.subr.bf16.mxu1 %v3143_v49 }
 0x9ed   :  { %3146 = vmatpush3.bf16.msra.mxu1 %v3143_v49  ;;  %v2584_v49 = vld [vmem:[%s3840_s14] ss:$0 sm:$0xff] }
 0x9f0   :  { %2953 = vmatmul.mubr.msk.f32.vlgmr.msra.gmra.mrb[22].mxu1 %vm100_vm0, %v3394_v22 }
 0x9f1   :  { %2955 = vmatprep.mubr.msk.f32.mxu1 %vm100_vm0, %v3399_v24 }
 0x9f4   :  { %2956 = vmatmul.mubr.msk.f32.gmra.mrb[24].mxu1 %vm100_vm0, %v3416_v28 }
 0xab3   :  { %v2927_v29 = vpop.f32.mrb[18].mxu1 }
 0xab4   :  { %v1711_v50 = vpop.f32.mrb[19].mxu1 }
 0xab5   :  { %2930 = vmatprep.mubr.msk.f32.mxu0 %vm398_vm1, %v1711_v50 }
 0xab6   :  { %2931 = vmatmul.mubr.msk.f32.vlgmr.msra.gmra.mrb[16].mxu0 %vm398_vm1, %v2927_v29 }
 0xab7   :  { %2966 = vmatprep.mubr.msk.f32.mxu0 %vm100_vm0, %v3469_v55  ;;  %3150 = vmatpush3.bf16.msra.mxu0 %v3147_v7 }
 0xab8   :  { %3152 = vmatprep.subr.bf16.mxu0 %v3151_v9 }
 0xabb   :  { %v2943_v22 = vpop.f32.mrb[20].mxu1  ;;  %3154 = vmatpush3.bf16.msra.mxu0 %v3151_v9 }
 0xabc   :  { %v1884_v24 = vpop.f32.mrb[21].mxu1  ;;  %v1890_v2 = vadd.f32 %v2943_v22, %v2550_v8 }
 0xabd   :  { %v1885_v28 = vadd.f32 %v2550_v8, %v1884_v24 }
 0xabe   :  { %2967 = vmatmul.mubr.msk.f32.vlgmr.msra.gmra.mrb[24].mxu0 %vm100_vm0, %v3485_v60 }
 0xabf   :  { %2980 = vmatprep.mubr.msk.f32.mxu1 %vm398_vm1, %v1885_v28  ;;  %2969 = vmatprep.mubr.msk.f32.mxu0 %vm100_vm0, %v3487_v61 }
 0xac2   :  { %2970 = vmatmul.mubr.msk.f32.gmra.mrb[26].mxu0 %vm100_vm0, %v3497_v0 }
 0xac3   :  { %v2954_v52 = vpop.f32.mrb[22].mxu1 }
 0xac4   :  { %v1978_v53 = vadd.f32 %v2954_v52, %v2558_v51  ;;  %v1972_v54 = vpop.f32.mrb[23].mxu1 }
 0xac5   :  { %v1973_v56 = vadd.f32 %v2558_v51, %v1972_v54 }
 0xac7   :  { %v3155_v57 = vpack.c.bf16 %v1978_v53, %v1973_v56  ;;  %v2957_v58 = vpop.f32.mrb[24].mxu1 }
 0xac8   :  { %v1988_v55 = vadd.f32 %v2957_v58, %v2558_v51  ;;  %v1982_v59 = vpop.f32.mrb[25].mxu1 }
 0xac9   :  { %3157 = vmatprep.subr.msk.bf16.mxu1 %vm3432_vm2, %v3155_v57  ;;  %v1983_v62 = vadd.f32 %v2558_v51, %v1982_v59 }
 0xaca   :  { %3160 = vmatpush3.bf16.xpose.msk.msra.mxu1 %vm3432_vm2, %v3155_v57 }
 0xacb   :  { %v3161_v63 = vpack.c.bf16 %v1988_v55, %v1983_v62 }
 0xacd   :  { %3163 = vmatprep.subr.msk.bf16.mxu1 %vm3432_vm2, %v3161_v63 }
 0xad2   :  { %3166 = vmatpush3.bf16.xpose.msk.msra.mxu1 %vm3432_vm2, %v3161_v63 }
 0xad9   :  { %2981 = vmatmul.mubr.msk.f32.vlgmr.msra.gmra.mrb[26].mxu1 %vm398_vm1, %v1890_v2 }
 0xb91   :  { %v2968_v19 = vpop.f32.mrb[24].mxu0 }
 0xb92   :  { %v2076_v32 = vadd.f32 %v2968_v19, %v2568_v31  ;;  %v2070_v12 = vpop.f32.mrb[25].mxu0 }
 0xb93   :  { %v2071_v11 = vadd.f32 %v2568_v31, %v2070_v12 }
 0xb95   :  { %v3167_v33 = vpack.c.bf16 %v2076_v32, %v2071_v11  ;;  %v2971_v34 = vpop.f32.mrb[26].mxu0 }
 0xb96   :  { %v2080_v36 = vpop.f32.mrb[27].mxu0  ;;  %v2086_v37 = vadd.f32 %v2971_v34, %v2568_v31 }
 0xb97   :  { %v2081_v38 = vadd.f32 %v2568_v31, %v2080_v36  ;;  %3168 = vmatprep.subr.bf16.mxu0 %v3167_v33 }
 0xb98   :  { %3170 = vmatpush3.bf16.msra.mxu0 %v3167_v33 }
 0xb99   :  { %v3171_v39 = vpack.c.bf16 %v2086_v37, %v2081_v38 }
 0xb9b   :  { %3172 = vmatprep.subr.bf16.mxu0 %v3171_v39 }
 0xb9c   :  { %3174 = vmatpush3.bf16.msra.mxu0 %v3171_v39 }
 0xb9d   :  { %2994 = vmatprep.subr.mxu0 %v2581_v40 }
 0xbac   :  { %v2982_v10 = vpop.f32.mrb[26].mxu1 }
 0xbad   :  { %v2179_v13 = vadd.f32 %v2982_v10, %v3511_v3  ;;  %v2173_v14 = vpop.f32.mrb[27].mxu1 }
 0xbae   :  { %v2174_v15 = vadd.f32 %v2173_v14, %v3506_v1  ;;  %v2586_v14 = vld [vmem:[%s3842_s16] ss:$0 sm:$0xff] }
 0xbaf   :  { %v2185_v16 = vsel %vm100_vm0, %v2179_v13, -inf }
 0xbb0   :  { %2186 = vmax.xlane.f32.xlu1 %v2185_v16  ;;  %v2182_v17 = vsel %vm100_vm0, %v2174_v15, -inf }
 0xbb1   :  { %2183 = vmax.xlane.f32.xlu0 %v2182_v17 }
 0xc3d   :  { %v2187_v60 = vpop.xlane.xlu1 %2186 }
 0xc3e   :  { %v2189_v20 = vsub.f32 %v2179_v13, %v2187_v60  ;;  %v2184_v23 = vpop.xlane.xlu0 %2183 }
 0xc3f   :  { %v2188_v61 = vsub.f32 %v2174_v15, %v2184_v23 }
 0xc40   :  { %v2192_v25 = vmul.f32 1.442695, %v2189_v20 }
 0xc41   :  { %v2190_v27 = vmul.f32 1.442695, %v2188_v61 }
 0xc42   :  { %3208 = vpow2.f32 %v2192_v25 }
 0xc43   :  { %3210 = vpow2.f32 %v2190_v27 }
 0xc4c   :  { %v3209_v0 = vpop.eup %3208 }
 0xc4d   :  { %v3211_v3 = vpop.eup %3210  ;;  %v2197_v30 = vsel %vm100_vm0, %v3209_v0, 0.0 }
 0xc4e   :  { %2198 = vadd.xlane.f32.xlu1 %v2197_v30  ;;  %v2194_v1 = vsel %vm100_vm0, %v3211_v3, 0.0 }
 0xc4f   :  { %2195 = vadd.xlane.f32.xlu0 %v2194_v1 }
 0xcdb   :  { %v2199_v41 = vpop.xlane.xlu1 %2198 }
 0xcdc   :  { %3212 = vrcp.f32 %v2199_v41  ;;  %v2196_v42 = vpop.xlane.xlu0 %2195 }
 0xcdd   :  { %3214 = vrcp.f32 %v2196_v42 }
 0xce6   :  { %v3213_v43 = vpop.eup %3212 }
 0xce7   :  { %v3215_v44 = vpop.eup %3214  ;;  %v2203_v46 = vmul.f32 %v3213_v43, %v3209_v0 }
 0xce8   :  { %v2202_v45 = vmul.f32 %v3215_v44, %v3211_v3 }
 0xcea   :  { %2991 = vmatprep.mubr.msk.f32.mxu0 %vm100_vm0, %v2202_v45 }
 0xceb   :  { %2992 = vmatmul.mubr.msk.f32.vlgmr.msra.gmra.mrb[28].mxu0 %vm100_vm0, %v2203_v46 }
 0xcec   :  { %2995 = vmatpush3.msra.mxu0 %v2581_v40 }
 0xdbe   :  { %v2993_v47 = vpop.f32.mrb[28].mxu0 }
 0xdbf   :  { %v2276_v48 = vpop.f32.mrb[29].mxu0 }
 0xdc0   :  { %2996 = vmatprep.mubr.msk.f32.mxu0 %vm398_vm1, %v2276_v48 }
 0xdc1   :  { %2997 = vmatmul.mubr.msk.f32.vlgmr.msra.gmra.mrb[16].mxu0 %vm398_vm1, %v2993_v47 }
 0xe94   :  { %v2998_v21 = vpop.f32.mrb[16].mxu0 }
 0xe95   :  { %v2378_v29 = vadd.f32 %v2998_v21, %v2584_v49  ;;  %v2359_v50 = vpop.f32.mrb[17].mxu0 }
 0xe96   :  { %v2377_v8 = vadd.f32 %v2584_v49, %v2359_v50 }
 0xe97   :  { %v2380_v22 = vadd.f32 %v2378_v29, %v3407_v26 }
 0xe98   :  { %v2379_v24 = vadd.f32 %v2377_v8, %v3386_v18 }
 0xe99   :  { %v2384_v28 = vsel %vm100_vm0, %v2380_v22, 0.0 }
 0xe9a   :  { %2385 = vadd.xlane.f32.xlu1 %v2384_v28  ;;  %v2381_v51 = vsel %vm100_vm0, %v2379_v24, 0.0 }
 0xe9b   :  { %2382 = vadd.xlane.f32.xlu0 %v2381_v51 }
 0xf27   :  { %v2386_v52 = vpop.xlane.xlu1 %2385 }
 0xf28   :  { %v2389_v53 = vmul.f32 0.03125, %v2386_v52  ;;  %v2383_v54 = vpop.xlane.xlu0 %2382 }
 0xf29   :  { %v2388_v56 = vmul.f32 0.03125, %v2383_v54 }
 0xf2a   :  { %v2391_v57 = vsub.f32 %v2380_v22, %v2389_v53 }
 0xf2b   :  { %v2390_v58 = vsub.f32 %v2379_v24, %v2388_v56 }
 0xf2c   :  { %v2393_v55 = vmul.f32 %v2391_v57, %v2391_v57 }
 0xf2d   :  { %v2392_v59 = vmul.f32 %v2390_v58, %v2390_v58 }
 0xf2e   :  { %v2397_v62 = vsel %vm100_vm0, %v2393_v55, 0.0 }
 0xf2f   :  { %2398 = vadd.xlane.f32.xlu1 %v2397_v62  ;;  %v2394_v26 = vsel %vm100_vm0, %v2392_v59, 0.0 }
 0xf30   :  { %2395 = vadd.xlane.f32.xlu0 %v2394_v26 }
 0xfbc   :  { %v2399_v18 = vpop.xlane.xlu1 %2398 }
 0xfbd   :  { %v2401_v63 = vmul.f32 0.03125, %v2399_v18  ;;  %v2396_v2 = vpop.xlane.xlu0 %2395 }
 0xfbe   :  { %v2400_v4 = vmul.f32 0.03125, %v2396_v2 }
 0xfbf   :  { %v2403_v5 = vadd.f32 1e-05, %v2401_v63 }
 0xfc0   :  { %v2402_v6 = vadd.f32 1e-05, %v2400_v4 }
 0xfc1   :  { %3216 = vrsqrt.f32 %v2403_v5 }
 0xfc2   :  { %3218 = vrsqrt.f32 %v2402_v6 }
 0xfcb   :  { %v3217_v7 = vpop.eup %3216 }
 0xfcc   :  { %v3219_v9 = vpop.eup %3218  ;;  %v2407_v10 = vmul.f32 %v3217_v7, %v2391_v57 }
 0xfcd   :  { %v2406_v13 = vmul.f32 %v3219_v9, %v2390_v58 }
 0xfce   :  { %v2416_v15 = vmul.f32 %v2585_v35, %v2407_v10 }
 0xfcf   :  { %v2415_v16 = vmul.f32 %v2585_v35, %v2406_v13 }
 0xfd0   :  { %v2425_v17 = vadd.f32 %v2586_v14, %v2416_v15 }
 0xfd1   :  { %v2424_v19 = vadd.f32 %v2586_v14, %v2415_v16 }
 0xfd2   :  { %2427 = vst.msk [vmem:[#allocation2 + $0x8] sm:$0xff] %vm100_vm0, %v2425_v17 }
 0xfd3   :  { %2426 = vst.msk [vmem:[#allocation2] sm:$0xff] %vm100_vm0, %v2424_v19 }
 0xfd4   :  { %3231 = shalt.err (!%p3228_p4)
}
 0xfd5   :  { %s3232_s5 = scalar_lea.hbm %s3843_s17, 256 }
 0xfd6   :  { %p3233_p5 = scmp.ne.s32.totalorder %s3843_s17, %s3232_s5  ;;  %p3236_p6 = scmp.lt.u32.totalorder %s3232_s5, %s3843_s17 }
 0xfd8   :  { %p3238_p7 = pnand %p3236_p6, %p3233_p5 }
 0xfda   :  { %3241 = shalt.err (!%p3238_p7)
}
 0xfdb   :  { %s3245_s6 = smov 128   ;;  %s3246_s2 = smov 8  }
 0xfdc   :  { %2439 = dma.vmem_to_hbm [thread:$0]  %s2434_s4, 256, %s3843_s17, [#allocation3], %s3245_s6, %s3245_s6, %s3246_s2  }
 0xfdd   :  { %3242 = dma.done.wait [#allocation3], 256  }
 0xfde   :  { %3243 = vsyncadd [#allocation3], 4294967040 }
 0xfdf   :  { %2443 = vsyncpa [#allocation3], 1 }

</bundles_post_ra>
